<compile_context>
chip_gen: v6e
topology: v6e:2x2x1
jax: 0.10.0
libtpu: 0.0.40
codegen_flags: <defaults>
</compile_context>

<pallas_src>
import jax
import jax.numpy as jnp
from jax.experimental import pallas as pl
from jax.experimental.pallas import tpu as pltpu

D_IN, D_HID, D_OUT = 512, 256, 512
_W_ELEMS = D_IN * D_HID + D_HID * D_HID + D_HID * D_OUT
_B_ELEMS = D_HID + D_HID + D_OUT


def _round_up(x, m):
    return ((x + m - 1) // m) * m


def _adapter_kernel(x_ref, w1_ref, b1_ref, w2_ref, b2_ref, w3_ref, b3_ref, o_ref):
    # One batch-tile of the fused MLP: three MXU matmuls + f32 bias/ReLU on-chip.
    x = x_ref[...]                                                    # (tm, 512) compute dtype
    h1 = jnp.dot(x, w1_ref[...], preferred_element_type=jnp.float32) + b1_ref[...]
    h1 = jnp.maximum(h1, 0.0).astype(w2_ref.dtype)                    # feed MXU in weight dtype
    h2 = jnp.dot(h1, w2_ref[...], preferred_element_type=jnp.float32) + b2_ref[...]
    h2 = jnp.maximum(h2, 0.0).astype(w3_ref.dtype)
    y = jnp.dot(h2, w3_ref[...], preferred_element_type=jnp.float32) + b3_ref[...]
    o_ref[...] = y.astype(o_ref.dtype)


def _tm_cap():
    """Per-generation cap on the batch tile."""
    try:
        kind = jax.devices()[0].device_kind.lower()
    except Exception:
        kind = ""
    if "v5 lite" in kind or "v5e" in kind or "v5litepod" in kind:
        return 512   # v5e: 128-wide MXU, smallest scoped-VMEM default
    return 1024      # v6e / v7x (fits v7x's 64 MiB VMEM comfortably in bf16/f32)


def _pick_tm(B, cap):
    tm = min(cap, _round_up(max(B, 1), 8))
    # Keep >= 2 grid steps so the batch axis can shard across TensorCores (v7x).
    if B >= 16 and pl.cdiv(B, tm) < 2:
        tm = _round_up(pl.cdiv(B, 2), 8)
    return max(8, tm)


def _build_call(Bp, tm, compute_dtype, out_dtype, single_buffer_weights):
    grid = (Bp // tm,)

    def const_spec(shape):
        # Weights/biases never change block index across the grid.
        if single_buffer_weights:
            return pl.BlockSpec(shape, lambda i: (0, 0), pipeline_mode=pl.Buffered(1))
        return pl.BlockSpec(shape, lambda i: (0, 0))

    cs = jnp.dtype(compute_dtype).itemsize
    osz = jnp.dtype(out_dtype).itemsize
    wbufs = 1 if single_buffer_weights else 2
    vmem_est = (2 * tm * D_IN * cs                     # double-buffered x tile
                + 2 * tm * D_OUT * osz                 # double-buffered out tile
                + wbufs * (_W_ELEMS * cs + _B_ELEMS * 4)
                + 2 * tm * D_HID * 4)                  # h1/h2 f32 intermediates
    vmem_limit = int(min(48 << 20, max(16 << 20, 2 * vmem_est)))

    cost = pl.CostEstimate(
        flops=2 * Bp * _W_ELEMS,
        transcendentals=0,
        bytes_accessed=Bp * D_IN * cs + Bp * D_OUT * osz + _W_ELEMS * cs + _B_ELEMS * 4,
    )

    return pl.pallas_call(
        _adapter_kernel,
        out_shape=jax.ShapeDtypeStruct((Bp, D_OUT), out_dtype),
        grid_spec=pltpu.PrefetchScalarGridSpec(
            num_scalar_prefetch=0,
            grid=grid,
            in_specs=[
                pl.BlockSpec((tm, D_IN), lambda i: (i, 0)),   # x tile
                const_spec((D_IN, D_HID)),                    # w1
                const_spec((1, D_HID)),                       # b1 (f32)
                const_spec((D_HID, D_HID)),                   # w2
                const_spec((1, D_HID)),                       # b2 (f32)
                const_spec((D_HID, D_OUT)),                   # w3
                const_spec((1, D_OUT)),                       # b3 (f32)
            ],
            out_specs=pl.BlockSpec((tm, D_OUT), lambda i: (i, 0)),
        ),
        compiler_params=pltpu.CompilerParams(
            dimension_semantics=("parallel",),
            vmem_limit_bytes=vmem_limit,
        ),
        cost_estimate=cost,
    )


def textual_adapter(x, params, *, tm=None, compute_dtype=jnp.bfloat16):
    """x: [B, 512]. params: dict of w1,b1,w2,b2,w3,b3 with w stored [in, out]."""
    B, D = x.shape
    assert D == D_IN
    out_dtype = x.dtype

    if tm is None:
        tm = _pick_tm(B, _tm_cap())
    tm = max(8, _round_up(int(tm), 8))

    # Pad batch to a multiple of the tile (masked-off rows are just extra zeros).
    Bp = _round_up(B, tm)
    xp = x if Bp == B else jnp.pad(x, ((0, Bp - B), (0, 0)))
    xc = xp.astype(compute_dtype)

    w1 = params["w1"].astype(compute_dtype)
    w2 = params["w2"].astype(compute_dtype)
    w3 = params["w3"].astype(compute_dtype)
    b1 = params["b1"].astype(jnp.float32).reshape(1, D_HID)
    b2 = params["b2"].astype(jnp.float32).reshape(1, D_HID)
    b3 = params["b3"].astype(jnp.float32).reshape(1, D_OUT)

    args = (xc, w1, b1, w2, b2, w3, b3)
    try:
        out = _build_call(Bp, tm, compute_dtype, out_dtype, True)(*args)
    except Exception:
        # Fallback if single-buffered constant specs (pl.Buffered(1)) are not
        # supported by this JAX build; default double-buffering is still correct.
        out = _build_call(Bp, tm, compute_dtype, out_dtype, False)(*args)

    return out if Bp == B else out[:B]


def init_params(key):
    """Deterministic init matching nn.Linear shapes (weights pre-transposed to [in,out])."""
    ks = jax.random.split(key, 6)

    def linear(kw, kb, fan_in, fan_out):
        bound = 1.0 / jnp.sqrt(fan_in)
        w = jax.random.uniform(kw, (fan_in, fan_out), jnp.float32, -bound, bound)
        b = jax.random.uniform(kb, (1, fan_out), jnp.float32, -bound, bound)
        return w, b

    w1, b1 = linear(ks[0], ks[1], D_IN, D_HID)
    w2, b2 = linear(ks[2], ks[3], D_HID, D_HID)
    w3, b3 = linear(ks[4], ks[5], D_HID, D_OUT)
    return {"w1": w1, "b1": b1, "w2": w2, "b2": b2, "w3": w3, "b3": b3}


def _reference(x, p):
    h1 = jnp.maximum(x @ p["w1"] + p["b1"], 0.0)
    h2 = jnp.maximum(h1 @ p["w2"] + p["b2"], 0.0)
    return h2 @ p["w3"] + p["b3"]


if __name__ == "__main__":
    key = jax.random.PRNGKey(0)
    kx, kp, kx2 = jax.random.split(key, 3)

    params = init_params(kp)

    # Small, non-divisible batch: exercises padding + auto tile selection.
    B = 10
    x = jax.random.normal(kx, (B, D_IN), jnp.float32)
    ref = _reference(x, params)

    # Exact-precision path (f32 matmuls) — tight check.
    out_f32 = jax.block_until_ready(textual_adapter(x, params, compute_dtype=jnp.float32))
    assert out_f32.shape == (B, D_OUT)
    assert jnp.allclose(out_f32, ref, atol=1e-4, rtol=1e-4), "f32 path mismatch vs reference"

    # Default bf16-matmul path (f32 accumulation / bias / output) — looser check.
    out_bf16 = jax.block_until_ready(textual_adapter(x, params))
    assert out_bf16.shape == (B, D_OUT)
    assert jnp.allclose(out_bf16, ref, atol=5e-2, rtol=5e-2), "bf16 path mismatch vs reference"

    # Multi-step grid with an explicit (small) tile: exercises pipelining + padding.
    B2 = 40
    x2 = jax.random.normal(kx2, (B2, D_IN), jnp.float32)
    out2 = jax.block_until_ready(textual_adapter(x2, params, tm=16))
    ref2 = _reference(x2, params)
    assert out2.shape == (B2, D_OUT)
    assert jnp.allclose(out2, ref2, atol=5e-2, rtol=5e-2), "multi-tile path mismatch vs reference"

    print("KERNEL_OK")
</pallas_src>

<mosaic_0001>
module attributes {stable_mosaic.version = 11 : i64} {
  func.func @_adapter_kernel(%arg0: i32, %arg1: memref<16x512xf32, #tpu.memory_space<vmem>>, %arg2: memref<512x256xf32, #tpu.memory_space<vmem>>, %arg3: memref<1x256xf32, #tpu.memory_space<vmem>>, %arg4: memref<256x256xf32, #tpu.memory_space<vmem>>, %arg5: memref<1x256xf32, #tpu.memory_space<vmem>>, %arg6: memref<256x512xf32, #tpu.memory_space<vmem>>, %arg7: memref<1x512xf32, #tpu.memory_space<vmem>>, %arg8: memref<16x512xf32, #tpu.memory_space<vmem>>) attributes {dimension_semantics = [#tpu.dimension_semantics<parallel>], iteration_bounds = array<i64: 1>, scalar_prefetch = 0 : i64, scratch_operands = 0 : i64, tpu.core_type = #tpu.core_type<tc>, window_params = [{transform_indices = @transform_0, window_bounds = array<i64: 16, 512>}, {pipeline_mode = #tpu.pipeline_mode<synchronous>, transform_indices = @transform_1, window_bounds = array<i64: 512, 256>}, {pipeline_mode = #tpu.pipeline_mode<synchronous>, transform_indices = @transform_2, window_bounds = array<i64: 1, 256>}, {pipeline_mode = #tpu.pipeline_mode<synchronous>, transform_indices = @transform_3, window_bounds = array<i64: 256, 256>}, {pipeline_mode = #tpu.pipeline_mode<synchronous>, transform_indices = @transform_4, window_bounds = array<i64: 1, 256>}, {pipeline_mode = #tpu.pipeline_mode<synchronous>, transform_indices = @transform_5, window_bounds = array<i64: 256, 512>}, {pipeline_mode = #tpu.pipeline_mode<synchronous>, transform_indices = @transform_6, window_bounds = array<i64: 1, 512>}, {transform_indices = @transform_7, window_bounds = array<i64: 16, 512>}]} {
    %c0 = arith.constant 0 : index
    %c0_0 = arith.constant 0 : index
    %0 = vector.load %arg1[%c0, %c0_0] : memref<16x512xf32, #tpu.memory_space<vmem>>, vector<16x512xf32>
    %c0_1 = arith.constant 0 : index
    %c0_2 = arith.constant 0 : index
    %1 = vector.load %arg2[%c0_1, %c0_2] : memref<512x256xf32, #tpu.memory_space<vmem>>, vector<512x256xf32>
    %cst = arith.constant dense<0.000000e+00> : vector<16x256xf32>
    %2 = tpu.matmul %0, %1, %cst {dimension_numbers = #tpu.dot_dimension_numbers<[1], [0], [0], [1], [0, 0, 1, 1], [], []>} : vector<16x512xf32>, vector<512x256xf32>, vector<16x256xf32> -> vector<16x256xf32>
    %c0_3 = arith.constant 0 : index
    %c0_4 = arith.constant 0 : index
    %3 = vector.load %arg3[%c0_3, %c0_4] : memref<1x256xf32, #tpu.memory_space<vmem>>, vector<1x256xf32>
    %4 = vector.broadcast %3 : vector<1x256xf32> to vector<16x256xf32>
    %5 = arith.addf %2, %4 : vector<16x256xf32>
    %cst_5 = arith.constant 0.000000e+00 : f32
    %6 = vector.broadcast %cst_5 : f32 to vector<16x256xf32>
    %7 = arith.maximumf %5, %6 : vector<16x256xf32>
    %c0_6 = arith.constant 0 : index
    %c0_7 = arith.constant 0 : index
    %8 = vector.load %arg4[%c0_6, %c0_7] : memref<256x256xf32, #tpu.memory_space<vmem>>, vector<256x256xf32>
    %cst_8 = arith.constant dense<0.000000e+00> : vector<16x256xf32>
    %9 = tpu.matmul %7, %8, %cst_8 {dimension_numbers = #tpu.dot_dimension_numbers<[1], [0], [0], [1], [0, 0, 1, 1], [], []>} : vector<16x256xf32>, vector<256x256xf32>, vector<16x256xf32> -> vector<16x256xf32>
    %c0_9 = arith.constant 0 : index
    %c0_10 = arith.constant 0 : index
    %10 = vector.load %arg5[%c0_9, %c0_10] : memref<1x256xf32, #tpu.memory_space<vmem>>, vector<1x256xf32>
    %11 = vector.broadcast %10 : vector<1x256xf32> to vector<16x256xf32>
    %12 = arith.addf %9, %11 : vector<16x256xf32>
    %cst_11 = arith.constant 0.000000e+00 : f32
    %13 = vector.broadcast %cst_11 : f32 to vector<16x256xf32>
    %14 = arith.maximumf %12, %13 : vector<16x256xf32>
    %c0_12 = arith.constant 0 : index
    %c0_13 = arith.constant 0 : index
    %15 = vector.load %arg6[%c0_12, %c0_13] : memref<256x512xf32, #tpu.memory_space<vmem>>, vector<256x512xf32>
    %cst_14 = arith.constant dense<0.000000e+00> : vector<16x512xf32>
    %16 = tpu.matmul %14, %15, %cst_14 {dimension_numbers = #tpu.dot_dimension_numbers<[1], [0], [0], [1], [0, 0, 1, 1], [], []>} : vector<16x256xf32>, vector<256x512xf32>, vector<16x512xf32> -> vector<16x512xf32>
    %c0_15 = arith.constant 0 : index
    %c0_16 = arith.constant 0 : index
    %17 = vector.load %arg7[%c0_15, %c0_16] : memref<1x512xf32, #tpu.memory_space<vmem>>, vector<1x512xf32>
    %18 = vector.broadcast %17 : vector<1x512xf32> to vector<16x512xf32>
    %19 = arith.addf %16, %18 : vector<16x512xf32>
    %c0_17 = arith.constant 0 : index
    %c0_18 = arith.constant 0 : index
    %20 = vector.load %arg8[%c0_17, %c0_18] : memref<16x512xf32, #tpu.memory_space<vmem>>, vector<16x512xf32>
    tpu.vector_store %arg8[%c0_17, %c0_18], %19 {strides = array<i32>} : memref<16x512xf32, #tpu.memory_space<vmem>>, vector<16x512xf32>,
    return
  }
  func.func @transform_0(%arg0: i32) -> (i32, i32) {
    %c0_i32 = arith.constant 0 : i32
    %c0_i32_0 = arith.constant 0 : i32
    return %arg0, %c0_i32 : i32, i32
  }
  func.func @transform_1(%arg0: i32) -> (i32, i32) {
    %c0_i32 = arith.constant 0 : i32
    %c0_i32_0 = arith.constant 0 : i32
    %c0_i32_1 = arith.constant 0 : i32
    return %c0_i32, %c0_i32_0 : i32, i32
  }
  func.func @transform_2(%arg0: i32) -> (i32, i32) {
    %c0_i32 = arith.constant 0 : i32
    %c0_i32_0 = arith.constant 0 : i32
    %c0_i32_1 = arith.constant 0 : i32
    return %c0_i32, %c0_i32_0 : i32, i32
  }
  func.func @transform_3(%arg0: i32) -> (i32, i32) {
    %c0_i32 = arith.constant 0 : i32
    %c0_i32_0 = arith.constant 0 : i32
    %c0_i32_1 = arith.constant 0 : i32
    return %c0_i32, %c0_i32_0 : i32, i32
  }
  func.func @transform_4(%arg0: i32) -> (i32, i32) {
    %c0_i32 = arith.constant 0 : i32
    %c0_i32_0 = arith.constant 0 : i32
    %c0_i32_1 = arith.constant 0 : i32
    return %c0_i32, %c0_i32_0 : i32, i32
  }
  func.func @transform_5(%arg0: i32) -> (i32, i32) {
    %c0_i32 = arith.constant 0 : i32
    %c0_i32_0 = arith.constant 0 : i32
    %c0_i32_1 = arith.constant 0 : i32
    return %c0_i32, %c0_i32_0 : i32, i32
  }
  func.func @transform_6(%arg0: i32) -> (i32, i32) {
    %c0_i32 = arith.constant 0 : i32
    %c0_i32_0 = arith.constant 0 : i32
    %c0_i32_1 = arith.constant 0 : i32
    return %c0_i32, %c0_i32_0 : i32, i32
  }
  func.func @transform_7(%arg0: i32) -> (i32, i32) {
    %c0_i32 = arith.constant 0 : i32
    %c0_i32_0 = arith.constant 0 : i32
    return %arg0, %c0_i32 : i32, i32
  }
}

module attributes {stable_mosaic.version = 11 : i64} {
  func.func @_adapter_kernel(%arg0: i32, %arg1: memref<16x512xf32, #tpu.memory_space<vmem>>, %arg2: memref<512x256xf32, #tpu.memory_space<vmem>>, %arg3: memref<1x256xf32, #tpu.memory_space<vmem>>, %arg4: memref<256x256xf32, #tpu.memory_space<vmem>>, %arg5: memref<1x256xf32, #tpu.memory_space<vmem>>, %arg6: memref<256x512xf32, #tpu.memory_space<vmem>>, %arg7: memref<1x512xf32, #tpu.memory_space<vmem>>, %arg8: memref<16x512xf32, #tpu.memory_space<vmem>>) attributes {dimension_semantics = [#tpu.dimension_semantics<parallel>], iteration_bounds = array<i64: 1>, scalar_prefetch = 0 : i64, scratch_operands = 0 : i64, tpu.core_type = #tpu.core_type<tc>, window_params = [{transform_indices = @transform_0, window_bounds = array<i64: 16, 512>}, {pipeline_mode = #tpu.pipeline_mode<synchronous>, transform_indices = @transform_1, window_bounds = array<i64: 512, 256>}, {pipeline_mode = #tpu.pipeline_mode<synchronous>, transform_indices = @transform_2, window_bounds = array<i64: 1, 256>}, {pipeline_mode = #tpu.pipeline_mode<synchronous>, transform_indices = @transform_3, window_bounds = array<i64: 256, 256>}, {pipeline_mode = #tpu.pipeline_mode<synchronous>, transform_indices = @transform_4, window_bounds = array<i64: 1, 256>}, {pipeline_mode = #tpu.pipeline_mode<synchronous>, transform_indices = @transform_5, window_bounds = array<i64: 256, 512>}, {pipeline_mode = #tpu.pipeline_mode<synchronous>, transform_indices = @transform_6, window_bounds = array<i64: 1, 512>}, {transform_indices = @transform_7, window_bounds = array<i64: 16, 512>}]} {
    %c0 = arith.constant 0 : index
    %c0_0 = arith.constant 0 : index
    %0 = vector.load %arg1[%c0, %c0_0] : memref<16x512xf32, #tpu.memory_space<vmem>>, vector<16x512xf32>
    %c0_1 = arith.constant 0 : index
    %c0_2 = arith.constant 0 : index
    %1 = vector.load %arg2[%c0_1, %c0_2] : memref<512x256xf32, #tpu.memory_space<vmem>>, vector<512x256xf32>
    %cst = arith.constant dense<0.000000e+00> : vector<16x256xf32>
    %2 = tpu.matmul %0, %1, %cst {dimension_numbers = #tpu.dot_dimension_numbers<[1], [0], [0], [1], [0, 0, 1, 1], [], []>} : vector<16x512xf32>, vector<512x256xf32>, vector<16x256xf32> -> vector<16x256xf32>
    %c0_3 = arith.constant 0 : index
    %c0_4 = arith.constant 0 : index
    %3 = vector.load %arg3[%c0_3, %c0_4] : memref<1x256xf32, #tpu.memory_space<vmem>>, vector<1x256xf32>
    %4 = vector.broadcast %3 : vector<1x256xf32> to vector<16x256xf32>
    %5 = arith.addf %2, %4 : vector<16x256xf32>
    %cst_5 = arith.constant 0.000000e+00 : f32
    %6 = vector.broadcast %cst_5 : f32 to vector<16x256xf32>
    %7 = arith.maximumf %5, %6 : vector<16x256xf32>
    %c0_6 = arith.constant 0 : index
    %c0_7 = arith.constant 0 : index
    %8 = vector.load %arg4[%c0_6, %c0_7] : memref<256x256xf32, #tpu.memory_space<vmem>>, vector<256x256xf32>
    %cst_8 = arith.constant dense<0.000000e+00> : vector<16x256xf32>
    %9 = tpu.matmul %7, %8, %cst_8 {dimension_numbers = #tpu.dot_dimension_numbers<[1], [0], [0], [1], [0, 0, 1, 1], [], []>} : vector<16x256xf32>, vector<256x256xf32>, vector<16x256xf32> -> vector<16x256xf32>
    %c0_9 = arith.constant 0 : index
    %c0_10 = arith.constant 0 : index
    %10 = vector.load %arg5[%c0_9, %c0_10] : memref<1x256xf32, #tpu.memory_space<vmem>>, vector<1x256xf32>
    %11 = vector.broadcast %10 : vector<1x256xf32> to vector<16x256xf32>
    %12 = arith.addf %9, %11 : vector<16x256xf32>
    %cst_11 = arith.constant 0.000000e+00 : f32
    %13 = vector.broadcast %cst_11 : f32 to vector<16x256xf32>
    %14 = arith.maximumf %12, %13 : vector<16x256xf32>
    %c0_12 = arith.constant 0 : index
    %c0_13 = arith.constant 0 : index
    %15 = vector.load %arg6[%c0_12, %c0_13] : memref<256x512xf32, #tpu.memory_space<vmem>>, vector<256x512xf32>
    %cst_14 = arith.constant dense<0.000000e+00> : vector<16x512xf32>
    %16 = tpu.matmul %14, %15, %cst_14 {dimension_numbers = #tpu.dot_dimension_numbers<[1], [0], [0], [1], [0, 0, 1, 1], [], []>} : vector<16x256xf32>, vector<256x512xf32>, vector<16x512xf32> -> vector<16x512xf32>
    %c0_15 = arith.constant 0 : index
    %c0_16 = arith.constant 0 : index
    %17 = vector.load %arg7[%c0_15, %c0_16] : memref<1x512xf32, #tpu.memory_space<vmem>>, vector<1x512xf32>
    %18 = vector.broadcast %17 : vector<1x512xf32> to vector<16x512xf32>
    %19 = arith.addf %16, %18 : vector<16x512xf32>
    %c0_17 = arith.constant 0 : index
    %c0_18 = arith.constant 0 : index
    %20 = vector.load %arg8[%c0_17, %c0_18] : memref<16x512xf32, #tpu.memory_space<vmem>>, vector<16x512xf32>
    tpu.vector_store %arg8[%c0_17, %c0_18], %19 {strides = array<i32>} : memref<16x512xf32, #tpu.memory_space<vmem>>, vector<16x512xf32>,
    return
  }
  func.func @transform_0(%arg0: i32) -> (i32, i32) {
    %c0_i32 = arith.constant 0 : i32
    %c0_i32_0 = arith.constant 0 : i32
    return %arg0, %c0_i32 : i32, i32
  }
  func.func @transform_1(%arg0: i32) -> (i32, i32) {
    %c0_i32 = arith.constant 0 : i32
    %c0_i32_0 = arith.constant 0 : i32
    %c0_i32_1 = arith.constant 0 : i32
    return %c0_i32, %c0_i32_0 : i32, i32
  }
  func.func @transform_2(%arg0: i32) -> (i32, i32) {
    %c0_i32 = arith.constant 0 : i32
    %c0_i32_0 = arith.constant 0 : i32
    %c0_i32_1 = arith.constant 0 : i32
    return %c0_i32, %c0_i32_0 : i32, i32
  }
  func.func @transform_3(%arg0: i32) -> (i32, i32) {
    %c0_i32 = arith.constant 0 : i32
    %c0_i32_0 = arith.constant 0 : i32
    %c0_i32_1 = arith.constant 0 : i32
    return %c0_i32, %c0_i32_0 : i32, i32
  }
  func.func @transform_4(%arg0: i32) -> (i32, i32) {
    %c0_i32 = arith.constant 0 : i32
    %c0_i32_0 = arith.constant 0 : i32
    %c0_i32_1 = arith.constant 0 : i32
    return %c0_i32, %c0_i32_0 : i32, i32
  }
  func.func @transform_5(%arg0: i32) -> (i32, i32) {
    %c0_i32 = arith.constant 0 : i32
    %c0_i32_0 = arith.constant 0 : i32
    %c0_i32_1 = arith.constant 0 : i32
    return %c0_i32, %c0_i32_0 : i32, i32
  }
  func.func @transform_6(%arg0: i32) -> (i32, i32) {
    %c0_i32 = arith.constant 0 : i32
    %c0_i32_0 = arith.constant 0 : i32
    %c0_i32_1 = arith.constant 0 : i32
    return %c0_i32, %c0_i32_0 : i32, i32
  }
  func.func @transform_7(%arg0: i32) -> (i32, i32) {
    %c0_i32 = arith.constant 0 : i32
    %c0_i32_0 = arith.constant 0 : i32
    return %arg0, %c0_i32 : i32, i32
  }
}

</mosaic_0001>

<bundles_post_ra>
// kernel: tpu_custom_call.1
= control target key start
LH: loop header
LB: loop body
LE: loop exit
PB: predicated region body
PF: predicated region fallthrough
CT: control target
= control target key end

     0   :  { %12 = vsyncpa [#allocation3], 0  ;;  %s1457_s0 = inlined_call_operand.hbm [shape: f32[16,512], index: 0, kind: input, shape index: {}]   ;;  %s1458_s1 = inlined_call_operand.hbm [shape: f32[512,256], index: 1, kind: input, shape index: {}]   ;;  %s1459_s2 = inlined_call_operand.vmem [shape: f32[1,256], index: 2, kind: input, shape index: {}]   ;;  %s1460_s3 = inlined_call_operand.hbm [shape: f32[256,256], index: 3, kind: input, shape index: {}]   ;;  %s1461_s4 = inlined_call_operand.hbm [shape: f32[1,256], index: 4, kind: input, shape index: {}]   ;;  %s1462_s5 = inlined_call_operand.hbm [shape: f32[256,512], index: 5, kind: input, shape index: {}]   ;;  %s1463_s6 = inlined_call_operand.vmem [shape: f32[1,512], index: 6, kind: input, shape index: {}]   ;;  %s1464_s7 = inlined_call_operand.hbm [shape: f32[16,512], index: 7, kind: output, shape index: {}]  }
   0x1   :  { %13 = vsyncpa [#allocation6], 0 }
   0x2   :  { %14 = vsyncpa [#allocation9], 0 }
   0x3   :  { %15 = vsyncpa [#allocation4], 0  ;;  %s1089_s24 = smov [#allocation5]  }
   0x4   :  { %s33_s25 = sshll.u32 %s1089_s24, 4  ;;  %s34_s25 = int_to_ptr.vmem [resolvable:$true] %s33_s25 }
   0x5   :  { %s969_s26 = scalar_lea.vmem %s34_s25, 16384  ;;  %p974_p1 = scmp.lt.s32.totalorder %s34_s25, %s34_s25 }
   0x6   :  { %p970_p0 = scmp.ne.s32.totalorder %s34_s25, %s969_s26  ;;  %p975_p2 = scmp.lt.s32.totalorder %s969_s26, %s969_s26 }
   0x8   :  { %p976_p3 = por %p975_p2, %p974_p1 }
   0xa   :  { %p977_p4 = pnand %p976_p3, %p970_p0 }
   0xc   :  { %980 = shalt.err (!%p977_p4)
}
   0xd   :  { %s1090_s27 = smov 256   ;;  %s1091_s28 = smov 16  }
   0xe   :  { %39 = dma.hbm_to_vmem [thread:$0]  %s1458_s1, 16384, %s34_s25, [#allocation6], %s1090_s27, %s1090_s27, %s1091_s28  }
   0xf   :  { %s1092_s8 = smov [#allocation8]   ;;  %s1093_s10 = smov [#allocation2]  }
  0x10   :  { %s60_s9 = sshll.u32 %s1092_s8, 4  ;;  %s21_s11 = sshll.u32 %s1093_s10, 4  ;;  %s61_s9 = int_to_ptr.vmem [resolvable:$true] %s60_s9  ;;  %s22_s11 = int_to_ptr.vmem [resolvable:$true] %s21_s11 }
  0x11   :  { %s989_s12 = scalar_lea.vmem %s61_s9, 32  ;;  %p994_p6 = scmp.lt.s32.totalorder %s61_s9, %s61_s9 }
  0x12   :  { %p990_p5 = scmp.ne.s32.totalorder %s61_s9, %s989_s12  ;;  %p995_p7 = scmp.lt.s32.totalorder %s989_s12, %s989_s12 }
  0x14   :  { %p996_p8 = por %p995_p7, %p994_p6 }
  0x16   :  { %p997_p9 = pnand %p996_p8, %p990_p5 }
  0x18   :  { %1000 = shalt.err (!%p997_p9)
}
  0x19   :  { %63 = dma.hbm_to_vmem [thread:$0]  %s1461_s4, 32, %s61_s9, [#allocation9]  }
  0x1a   :  { %s1009_s15 = scalar_lea.vmem %s22_s11, 1024  ;;  %p1014_p11 = scmp.lt.s32.totalorder %s22_s11, %s22_s11 }
  0x1b   :  { %p1010_p10 = scmp.ne.s32.totalorder %s22_s11, %s1009_s15  ;;  %p1015_p12 = scmp.lt.s32.totalorder %s1009_s15, %s1009_s15 }
  0x1d   :  { %p1016_p13 = por %p1015_p12, %p1014_p11 }
  0x1f   :  { %p1017_p0 = pnand %p1016_p13, %p1010_p10 }
  0x21   :  { %1020 = shalt.err (!%p1017_p0)
}
  0x22   :  { %s1094_s1 = smov 512   ;;  %s1095_s16 = smov 32  }
  0x23   :  { %27 = dma.hbm_to_vmem [thread:$0]  %s1457_s0, 1024, %s22_s11, [#allocation3], %s1094_s1, %s1094_s1, %s1095_s16  }
  0x24   :  { %s1096_s19 = smov [#allocation7]   ;;  %s1097_s4 = smov [#allocation10]  }
  0x25   :  { %s47_s20 = sshll.u32 %s1096_s19, 4  ;;  %s69_s21 = sshll.u32 %s1097_s4, 4  ;;  %s48_s20 = int_to_ptr.vmem [resolvable:$true] %s47_s20  ;;  %s70_s21 = int_to_ptr.vmem [resolvable:$true] %s69_s21 }
  0x26   :  { %s1029_s22 = scalar_lea.vmem %s48_s20, 8192  ;;  %p1034_p2 = scmp.lt.s32.totalorder %s48_s20, %s48_s20 }
  0x27   :  { %p1030_p1 = scmp.ne.s32.totalorder %s48_s20, %s1029_s22  ;;  %p1035_p3 = scmp.lt.s32.totalorder %s1029_s22, %s1029_s22 }
  0x29   :  { %p1036_p4 = por %p1035_p3, %p1034_p2 }
  0x2b   :  { %p1037_p5 = pnand %p1036_p4, %p1030_p1 }
  0x2d   :  { %1040 = shalt.err (!%p1037_p5)
}
  0x2e   :  { %53 = dma.hbm_to_vmem [thread:$0]  %s1460_s3, 8192, %s48_s20, [#allocation6], %s1090_s27, %s1090_s27, %s1091_s28  }
  0x2f   :  { %s1049_s0 = scalar_lea.vmem %s70_s21, 16384  ;;  %p1054_p7 = scmp.lt.s32.totalorder %s70_s21, %s70_s21 }
  0x30   :  { %p1050_p6 = scmp.ne.s32.totalorder %s70_s21, %s1049_s0  ;;  %p1055_p8 = scmp.lt.s32.totalorder %s1049_s0, %s1049_s0 }
  0x32   :  { %p1056_p9 = por %p1055_p8, %p1054_p7 }
  0x34   :  { %p1057_p10 = pnand %p1056_p9, %p1050_p6 }
  0x36   :  { %1060 = shalt.err (!%p1057_p10)
}
  0x37   :  { %75 = dma.hbm_to_vmem [thread:$0]  %s1462_s5, 16384, %s70_s21, [#allocation9], %s1094_s1, %s1094_s1, %s1095_s16  }
  0x38   :  { %1081 = dma.done.wait [#allocation3], 1024  }
  0x39   :  { %1082 = vsyncadd [#allocation3], 4294966272 }
  0x3a   :  { %1083 = dma.done.wait [#allocation6], 24576  }
  0x3b   :  { %1084 = vsyncadd [#allocation6], 4294942720 }
  0x3c   :  { %1085 = dma.done.wait [#allocation9], 16416  }
  0x3d   :  { %1086 = vsyncadd [#allocation9], 4294950880  ;;  %v132_v0 = vld [vmem:[#allocation5 + $0xf8] sm:$0xff]  ;;  %v131_v2 = vld [vmem:[#allocation5 + $0xf0] sm:$0xff] }
  0x3e   :  { %v196_v1 = vld [vmem:[#allocation5 + $0x2f8] sm:$0xff]  ;;  %241 = vmatprep.subr.mxu0 %v132_v0  ;;  %v195_v3 = vld [vmem:[#allocation5 + $0x2f0] sm:$0xff]  ;;  %v130_v4 = vld [vmem:[#allocation5 + $0xe8] sm:$0xff] }
  0x3f   :  { %318 = vmatprep.subr.mxu1 %v196_v1  ;;  %v194_v5 = vld [vmem:[#allocation5 + $0x2e8] sm:$0xff]  ;;  %242 = vmatpush1.msra.mxu0 %v131_v2  ;;  %v129_v6 = vld [vmem:[#allocation5 + $0xe0] sm:$0xff]  ;;  %v128_v8 = vld [vmem:[#allocation5 + $0xd8] sm:$0xff] }
  0x40   :  { %319 = vmatpush1.msra.mxu1 %v195_v3  ;;  %v193_v7 = vld [vmem:[#allocation5 + $0x2e0] sm:$0xff]  ;;  %243 = vmatprep.subr.mxu0 %v130_v4  ;;  %v192_v9 = vld [vmem:[#allocation5 + $0x2d8] sm:$0xff]  ;;  %v127_v10 = vld [vmem:[#allocation5 + $0xd0] sm:$0xff] }
  0x41   :  { %320 = vmatprep.subr.mxu1 %v194_v5  ;;  %v191_v11 = vld [vmem:[#allocation5 + $0x2d0] sm:$0xff]  ;;  %244 = vmatpush1.msra.mxu0 %v129_v6  ;;  %v126_v12 = vld [vmem:[#allocation5 + $0xc8] sm:$0xff]  ;;  %v125_v14 = vld [vmem:[#allocation5 + $0xc0] sm:$0xff] }
  0x42   :  { %321 = vmatpush1.msra.mxu1 %v193_v7  ;;  %v190_v13 = vld [vmem:[#allocation5 + $0x2c8] sm:$0xff]  ;;  %245 = vmatprep.subr.mxu0 %v128_v8  ;;  %v189_v15 = vld [vmem:[#allocation5 + $0x2c0] sm:$0xff]  ;;  %v124_v16 = vld [vmem:[#allocation5 + $0xb8] sm:$0xff] }
  0x43   :  { %322 = vmatprep.subr.mxu1 %v192_v9  ;;  %246 = vmatpush1.msra.mxu0 %v127_v10  ;;  %v188_v17 = vld [vmem:[#allocation5 + $0x2b8] sm:$0xff]  ;;  %v123_v18 = vld [vmem:[#allocation5 + $0xb0] sm:$0xff]  ;;  %v122_v20 = vld [vmem:[#allocation5 + $0xa8] sm:$0xff] }
  0x44   :  { %323 = vmatpush1.msra.mxu1 %v191_v11  ;;  %247 = vmatprep.subr.mxu0 %v126_v12  ;;  %v187_v19 = vld [vmem:[#allocation5 + $0x2b0] sm:$0xff]  ;;  %v186_v21 = vld [vmem:[#allocation5 + $0x2a8] sm:$0xff]  ;;  %v121_v22 = vld [vmem:[#allocation5 + $0xa0] sm:$0xff] }
  0x45   :  { %324 = vmatprep.subr.mxu1 %v190_v13  ;;  %248 = vmatpush1.msra.mxu0 %v125_v14  ;;  %v185_v23 = vld [vmem:[#allocation5 + $0x2a0] sm:$0xff]  ;;  %v120_v24 = vld [vmem:[#allocation5 + $0x98] sm:$0xff]  ;;  %v119_v26 = vld [vmem:[#allocation5 + $0x90] sm:$0xff] }
  0x46   :  { %325 = vmatpush1.msra.mxu1 %v189_v15  ;;  %249 = vmatprep.subr.mxu0 %v124_v16  ;;  %v184_v25 = vld [vmem:[#allocation5 + $0x298] sm:$0xff]  ;;  %v183_v27 = vld [vmem:[#allocation5 + $0x290] sm:$0xff]  ;;  %v118_v28 = vld [vmem:[#allocation5 + $0x88] sm:$0xff] }
  0x47   :  { %326 = vmatprep.subr.mxu1 %v188_v17  ;;  %250 = vmatpush1.msra.mxu0 %v123_v18  ;;  %v182_v29 = vld [vmem:[#allocation5 + $0x288] sm:$0xff]  ;;  %v117_v30 = vld [vmem:[#allocation5 + $0x80] sm:$0xff]  ;;  %v116_v32 = vld [vmem:[#allocation5 + $0x78] sm:$0xff] }
  0x48   :  { %327 = vmatpush1.msra.mxu1 %v187_v19  ;;  %251 = vmatprep.subr.mxu0 %v122_v20  ;;  %v181_v31 = vld [vmem:[#allocation5 + $0x280] sm:$0xff]  ;;  %v180_v33 = vld [vmem:[#allocation5 + $0x278] sm:$0xff]  ;;  %v115_v34 = vld [vmem:[#allocation5 + $0x70] sm:$0xff] }
  0x49   :  { %328 = vmatprep.subr.mxu1 %v186_v21  ;;  %252 = vmatpush1.msra.mxu0 %v121_v22  ;;  %v179_v35 = vld [vmem:[#allocation5 + $0x270] sm:$0xff]  ;;  %v114_v36 = vld [vmem:[#allocation5 + $0x68] sm:$0xff]  ;;  %v113_v38 = vld [vmem:[#allocation5 + $0x60] sm:$0xff] }
  0x4a   :  { %329 = vmatpush1.msra.mxu1 %v185_v23  ;;  %253 = vmatprep.subr.mxu0 %v120_v24  ;;  %v178_v37 = vld [vmem:[#allocation5 + $0x268] sm:$0xff]  ;;  %v177_v39 = vld [vmem:[#allocation5 + $0x260] sm:$0xff]  ;;  %v112_v40 = vld [vmem:[#allocation5 + $0x58] sm:$0xff] }
  0x4b   :  { %330 = vmatprep.subr.mxu1 %v184_v25  ;;  %254 = vmatpush1.msra.mxu0 %v119_v26  ;;  %v176_v41 = vld [vmem:[#allocation5 + $0x258] sm:$0xff]  ;;  %v111_v42 = vld [vmem:[#allocation5 + $0x50] sm:$0xff]  ;;  %v110_v44 = vld [vmem:[#allocation5 + $0x48] sm:$0xff] }
  0x4c   :  { %331 = vmatpush1.msra.mxu1 %v183_v27  ;;  %255 = vmatprep.subr.mxu0 %v118_v28  ;;  %v175_v43 = vld [vmem:[#allocation5 + $0x250] sm:$0xff]  ;;  %v174_v45 = vld [vmem:[#allocation5 + $0x248] sm:$0xff]  ;;  %v109_v46 = vld [vmem:[#allocation5 + $0x40] sm:$0xff] }
  0x4d   :  { %332 = vmatprep.subr.mxu1 %v182_v29  ;;  %256 = vmatpush1.msra.mxu0 %v117_v30  ;;  %v173_v47 = vld [vmem:[#allocation5 + $0x240] sm:$0xff]  ;;  %v108_v48 = vld [vmem:[#allocation5 + $0x38] sm:$0xff]  ;;  %v107_v50 = vld [vmem:[#allocation5 + $0x30] sm:$0xff] }
  0x4e   :  { %333 = vmatpush1.msra.mxu1 %v181_v31  ;;  %257 = vmatprep.subr.mxu0 %v116_v32  ;;  %v172_v49 = vld [vmem:[#allocation5 + $0x238] sm:$0xff]  ;;  %v171_v51 = vld [vmem:[#allocation5 + $0x230] sm:$0xff]  ;;  %v106_v52 = vld [vmem:[#allocation5 + $0x28] sm:$0xff] }
  0x4f   :  { %334 = vmatprep.subr.mxu1 %v180_v33  ;;  %258 = vmatpush1.msra.mxu0 %v115_v34  ;;  %v170_v53 = vld [vmem:[#allocation5 + $0x228] sm:$0xff]  ;;  %v105_v54 = vld [vmem:[#allocation5 + $0x20] sm:$0xff]  ;;  %v104_v56 = vld [vmem:[#allocation5 + $0x18] sm:$0xff] }
  0x50   :  { %335 = vmatpush1.msra.mxu1 %v179_v35  ;;  %259 = vmatprep.subr.mxu0 %v114_v36  ;;  %v169_v55 = vld [vmem:[#allocation5 + $0x220] sm:$0xff]  ;;  %v168_v57 = vld [vmem:[#allocation5 + $0x218] sm:$0xff]  ;;  %v103_v58 = vld [vmem:[#allocation5 + $0x10] sm:$0xff] }
  0x51   :  { %336 = vmatprep.subr.mxu1 %v178_v37  ;;  %260 = vmatpush1.msra.mxu0 %v113_v38  ;;  %v167_v59 = vld [vmem:[#allocation5 + $0x210] sm:$0xff]  ;;  %v102_v60 = vld [vmem:[#allocation5 + $0x8] sm:$0xff]  ;;  %v101_v62 = vld [vmem:[#allocation5] sm:$0xff] }
  0x52   :  { %337 = vmatpush1.msra.mxu1 %v177_v39  ;;  %261 = vmatprep.subr.mxu0 %v112_v40  ;;  %v166_v61 = vld [vmem:[#allocation5 + $0x208] sm:$0xff]  ;;  %v165_v63 = vld [vmem:[#allocation5 + $0x200] sm:$0xff]  ;;  %v164_v0 = vld [vmem:[#allocation5 + $0x1f8] sm:$0xff] }
  0x53   :  { %338 = vmatprep.subr.mxu1 %v176_v41  ;;  %262 = vmatpush1.msra.mxu0 %v111_v42  ;;  %v228_v1 = vld [vmem:[#allocation5 + $0x3f8] sm:$0xff]  ;;  %v163_v2 = vld [vmem:[#allocation5 + $0x1f0] sm:$0xff]  ;;  %v162_v4 = vld [vmem:[#allocation5 + $0x1e8] sm:$0xff] }
  0x54   :  { %339 = vmatpush1.msra.mxu1 %v175_v43  ;;  %263 = vmatprep.subr.mxu0 %v110_v44  ;;  %v227_v3 = vld [vmem:[#allocation5 + $0x3f0] sm:$0xff]  ;;  %v226_v5 = vld [vmem:[#allocation5 + $0x3e8] sm:$0xff]  ;;  %v161_v6 = vld [vmem:[#allocation5 + $0x1e0] sm:$0xff] }
  0x55   :  { %340 = vmatprep.subr.mxu1 %v174_v45  ;;  %264 = vmatpush1.msra.mxu0 %v109_v46  ;;  %v225_v7 = vld [vmem:[#allocation5 + $0x3e0] sm:$0xff]  ;;  %v160_v8 = vld [vmem:[#allocation5 + $0x1d8] sm:$0xff]  ;;  %v159_v10 = vld [vmem:[#allocation5 + $0x1d0] sm:$0xff] }
  0x56   :  { %341 = vmatpush1.msra.mxu1 %v173_v47  ;;  %265 = vmatprep.subr.mxu0 %v108_v48  ;;  %v224_v9 = vld [vmem:[#allocation5 + $0x3d8] sm:$0xff]  ;;  %v223_v11 = vld [vmem:[#allocation5 + $0x3d0] sm:$0xff]  ;;  %v158_v12 = vld [vmem:[#allocation5 + $0x1c8] sm:$0xff] }
  0x57   :  { %342 = vmatprep.subr.mxu1 %v172_v49  ;;  %266 = vmatpush1.msra.mxu0 %v107_v50  ;;  %v222_v13 = vld [vmem:[#allocation5 + $0x3c8] sm:$0xff]  ;;  %v157_v14 = vld [vmem:[#allocation5 + $0x1c0] sm:$0xff]  ;;  %v156_v16 = vld [vmem:[#allocation5 + $0x1b8] sm:$0xff] }
  0x58   :  { %343 = vmatpush1.msra.mxu1 %v171_v51  ;;  %267 = vmatprep.subr.mxu0 %v106_v52  ;;  %v221_v15 = vld [vmem:[#allocation5 + $0x3c0] sm:$0xff]  ;;  %v220_v17 = vld [vmem:[#allocation5 + $0x3b8] sm:$0xff]  ;;  %v155_v18 = vld [vmem:[#allocation5 + $0x1b0] sm:$0xff] }
  0x59   :  { %344 = vmatprep.subr.mxu1 %v170_v53  ;;  %268 = vmatpush1.msra.mxu0 %v105_v54  ;;  %v219_v19 = vld [vmem:[#allocation5 + $0x3b0] sm:$0xff]  ;;  %v154_v20 = vld [vmem:[#allocation5 + $0x1a8] sm:$0xff]  ;;  %v153_v22 = vld [vmem:[#allocation5 + $0x1a0] sm:$0xff] }
  0x5a   :  { %345 = vmatpush1.msra.mxu1 %v169_v55  ;;  %269 = vmatprep.subr.mxu0 %v104_v56  ;;  %v218_v21 = vld [vmem:[#allocation5 + $0x3a8] sm:$0xff]  ;;  %v217_v23 = vld [vmem:[#allocation5 + $0x3a0] sm:$0xff]  ;;  %v152_v24 = vld [vmem:[#allocation5 + $0x198] sm:$0xff] }
  0x5b   :  { %346 = vmatprep.subr.mxu1 %v168_v57  ;;  %270 = vmatpush1.msra.mxu0 %v103_v58  ;;  %v216_v25 = vld [vmem:[#allocation5 + $0x398] sm:$0xff]  ;;  %v151_v26 = vld [vmem:[#allocation5 + $0x190] sm:$0xff]  ;;  %v150_v28 = vld [vmem:[#allocation5 + $0x188] sm:$0xff] }
  0x5c   :  { %347 = vmatpush1.msra.mxu1 %v167_v59  ;;  %271 = vmatprep.subr.mxu0 %v102_v60  ;;  %v215_v27 = vld [vmem:[#allocation5 + $0x390] sm:$0xff]  ;;  %v214_v29 = vld [vmem:[#allocation5 + $0x388] sm:$0xff]  ;;  %v149_v30 = vld [vmem:[#allocation5 + $0x180] sm:$0xff] }
  0x5d   :  { %348 = vmatprep.subr.mxu1 %v166_v61  ;;  %272 = vmatpush1.msra.mxu0 %v101_v62  ;;  %v213_v31 = vld [vmem:[#allocation5 + $0x380] sm:$0xff]  ;;  %v148_v32 = vld [vmem:[#allocation5 + $0x178] sm:$0xff]  ;;  %v147_v34 = vld [vmem:[#allocation5 + $0x170] sm:$0xff] }
  0x5e   :  { %349 = vmatpush1.msra.mxu1 %v165_v63  ;;  %273 = vmatprep.subr.mxu0 %v164_v0  ;;  %v212_v33 = vld [vmem:[#allocation5 + $0x378] sm:$0xff]  ;;  %v211_v35 = vld [vmem:[#allocation5 + $0x370] sm:$0xff]  ;;  %v146_v36 = vld [vmem:[#allocation5 + $0x168] sm:$0xff] }
  0x5f   :  { %350 = vmatprep.subr.mxu1 %v228_v1  ;;  %274 = vmatpush2.msra.mxu0 %v163_v2  ;;  %v210_v37 = vld [vmem:[#allocation5 + $0x368] sm:$0xff]  ;;  %v145_v38 = vld [vmem:[#allocation5 + $0x160] sm:$0xff]  ;;  %v144_v40 = vld [vmem:[#allocation5 + $0x158] sm:$0xff] }
  0x60   :  { %351 = vmatpush2.msra.mxu1 %v227_v3  ;;  %275 = vmatprep.subr.mxu0 %v162_v4  ;;  %v209_v39 = vld [vmem:[#allocation5 + $0x360] sm:$0xff]  ;;  %v208_v41 = vld [vmem:[#allocation5 + $0x358] sm:$0xff]  ;;  %v143_v42 = vld [vmem:[#allocation5 + $0x150] sm:$0xff] }
  0x61   :  { %352 = vmatprep.subr.mxu1 %v226_v5  ;;  %276 = vmatpush2.msra.mxu0 %v161_v6  ;;  %v207_v43 = vld [vmem:[#allocation5 + $0x350] sm:$0xff]  ;;  %v142_v44 = vld [vmem:[#allocation5 + $0x148] sm:$0xff]  ;;  %v141_v46 = vld [vmem:[#allocation5 + $0x140] sm:$0xff] }
  0x62   :  { %353 = vmatpush2.msra.mxu1 %v225_v7  ;;  %277 = vmatprep.subr.mxu0 %v160_v8  ;;  %v206_v45 = vld [vmem:[#allocation5 + $0x348] sm:$0xff]  ;;  %v205_v47 = vld [vmem:[#allocation5 + $0x340] sm:$0xff]  ;;  %v140_v48 = vld [vmem:[#allocation5 + $0x138] sm:$0xff] }
  0x63   :  { %354 = vmatprep.subr.mxu1 %v224_v9  ;;  %278 = vmatpush2.msra.mxu0 %v159_v10  ;;  %v204_v49 = vld [vmem:[#allocation5 + $0x338] sm:$0xff]  ;;  %v139_v50 = vld [vmem:[#allocation5 + $0x130] sm:$0xff]  ;;  %v138_v52 = vld [vmem:[#allocation5 + $0x128] sm:$0xff] }
  0x64   :  { %355 = vmatpush2.msra.mxu1 %v223_v11  ;;  %279 = vmatprep.subr.mxu0 %v158_v12  ;;  %v203_v51 = vld [vmem:[#allocation5 + $0x330] sm:$0xff]  ;;  %v202_v53 = vld [vmem:[#allocation5 + $0x328] sm:$0xff]  ;;  %v137_v54 = vld [vmem:[#allocation5 + $0x120] sm:$0xff] }
  0x65   :  { %356 = vmatprep.subr.mxu1 %v222_v13  ;;  %280 = vmatpush2.msra.mxu0 %v157_v14  ;;  %v201_v55 = vld [vmem:[#allocation5 + $0x320] sm:$0xff]  ;;  %v136_v56 = vld [vmem:[#allocation5 + $0x118] sm:$0xff]  ;;  %v135_v58 = vld [vmem:[#allocation5 + $0x110] sm:$0xff] }
  0x66   :  { %357 = vmatpush2.msra.mxu1 %v221_v15  ;;  %281 = vmatprep.subr.mxu0 %v156_v16  ;;  %v200_v57 = vld [vmem:[#allocation5 + $0x318] sm:$0xff]  ;;  %v199_v59 = vld [vmem:[#allocation5 + $0x310] sm:$0xff]  ;;  %v134_v60 = vld [vmem:[#allocation5 + $0x108] sm:$0xff] }
  0x67   :  { %358 = vmatprep.subr.mxu1 %v220_v17  ;;  %282 = vmatpush2.msra.mxu0 %v155_v18  ;;  %v198_v61 = vld [vmem:[#allocation5 + $0x308] sm:$0xff]  ;;  %v133_v62 = vld [vmem:[#allocation5 + $0x100] sm:$0xff]  ;;  %v96_v1 = vld [vmem:[#allocation2 + $0x18] sm:$0xff] }
  0x68   :  { %359 = vmatpush2.msra.mxu1 %v219_v19  ;;  %283 = vmatprep.subr.mxu0 %v154_v20  ;;  %v94_v63 = vld [vmem:[#allocation2 + $0x8] sm:$0xff]  ;;  %v197_v0 = vld [vmem:[#allocation5 + $0x300] sm:$0xff]  ;;  %v95_v3 = vld [vmem:[#allocation2 + $0x10] sm:$0xff] }
  0x69   :  { %360 = vmatprep.subr.mxu1 %v218_v21  ;;  %284 = vmatpush2.msra.mxu0 %v153_v22  ;;  %v93_v2 = vld [vmem:[#allocation2] sm:$0xff]  ;;  %v98_v4 = vld [vmem:[#allocation2 + $0x28] sm:$0xff]  ;;  %v100_v5 = vld [vmem:[#allocation2 + $0x38] sm:$0xff] }
  0x6a   :  { %361 = vmatpush2.msra.mxu1 %v217_v23  ;;  %285 = vmatprep.subr.mxu0 %v152_v24  ;;  %v430_v6 = vld [vmem:[#allocation7 + $0xf8] sm:$0xff]  ;;  %v429_v7 = vld [vmem:[#allocation7 + $0xf0] sm:$0xff]  ;;  %v97_v8 = vld [vmem:[#allocation2 + $0x20] sm:$0xff] }
  0x6b   :  { %362 = vmatprep.subr.mxu1 %v216_v25  ;;  %286 = vmatpush2.msra.mxu0 %v151_v26  ;;  %v99_v9 = vld [vmem:[#allocation2 + $0x30] sm:$0xff]  ;;  %v428_v10 = vld [vmem:[#allocation7 + $0xe8] sm:$0xff]  ;;  %v427_v11 = vld [vmem:[#allocation7 + $0xe0] sm:$0xff] }
  0x6c   :  { %363 = vmatpush2.msra.mxu1 %v215_v27  ;;  %287 = vmatprep.subr.mxu0 %v150_v28  ;;  %v426_v12 = vld [vmem:[#allocation7 + $0xd8] sm:$0xff]  ;;  %v425_v13 = vld [vmem:[#allocation7 + $0xd0] sm:$0xff]  ;;  %v424_v14 = vld [vmem:[#allocation7 + $0xc8] sm:$0xff] }
  0x6d   :  { %364 = vmatprep.subr.mxu1 %v214_v29  ;;  %288 = vmatpush2.msra.mxu0 %v149_v30  ;;  %v423_v15 = vld [vmem:[#allocation7 + $0xc0] sm:$0xff]  ;;  %v422_v16 = vld [vmem:[#allocation7 + $0xb8] sm:$0xff]  ;;  %v421_v17 = vld [vmem:[#allocation7 + $0xb0] sm:$0xff] }
  0x6e   :  { %365 = vmatpush2.msra.mxu1 %v213_v31  ;;  %289 = vmatprep.subr.mxu0 %v148_v32  ;;  %v420_v18 = vld [vmem:[#allocation7 + $0xa8] sm:$0xff]  ;;  %v419_v19 = vld [vmem:[#allocation7 + $0xa0] sm:$0xff]  ;;  %v418_v20 = vld [vmem:[#allocation7 + $0x98] sm:$0xff] }
  0x6f   :  { %366 = vmatprep.subr.mxu1 %v212_v33  ;;  %290 = vmatpush2.msra.mxu0 %v147_v34  ;;  %v417_v21 = vld [vmem:[#allocation7 + $0x90] sm:$0xff]  ;;  %v416_v22 = vld [vmem:[#allocation7 + $0x88] sm:$0xff]  ;;  %v415_v23 = vld [vmem:[#allocation7 + $0x80] sm:$0xff] }
  0x70   :  { %367 = vmatpush2.msra.mxu1 %v211_v35  ;;  %291 = vmatprep.subr.mxu0 %v146_v36  ;;  %v414_v24 = vld [vmem:[#allocation7 + $0x78] sm:$0xff]  ;;  %v413_v25 = vld [vmem:[#allocation7 + $0x70] sm:$0xff]  ;;  %v412_v26 = vld [vmem:[#allocation7 + $0x68] sm:$0xff] }
  0x71   :  { %368 = vmatprep.subr.mxu1 %v210_v37  ;;  %292 = vmatpush2.msra.mxu0 %v145_v38  ;;  %v411_v27 = vld [vmem:[#allocation7 + $0x60] sm:$0xff]  ;;  %v410_v28 = vld [vmem:[#allocation7 + $0x58] sm:$0xff]  ;;  %v409_v29 = vld [vmem:[#allocation7 + $0x50] sm:$0xff] }
  0x72   :  { %369 = vmatpush2.msra.mxu1 %v209_v39  ;;  %293 = vmatprep.subr.mxu0 %v144_v40  ;;  %v408_v30 = vld [vmem:[#allocation7 + $0x48] sm:$0xff]  ;;  %v407_v31 = vld [vmem:[#allocation7 + $0x40] sm:$0xff]  ;;  %v406_v32 = vld [vmem:[#allocation7 + $0x38] sm:$0xff] }
  0x73   :  { %370 = vmatprep.subr.mxu1 %v208_v41  ;;  %294 = vmatpush2.msra.mxu0 %v143_v42  ;;  %v405_v33 = vld [vmem:[#allocation7 + $0x30] sm:$0xff]  ;;  %v404_v34 = vld [vmem:[#allocation7 + $0x28] sm:$0xff]  ;;  %v403_v35 = vld [vmem:[#allocation7 + $0x20] sm:$0xff] }
  0x74   :  { %371 = vmatpush2.msra.mxu1 %v207_v43  ;;  %295 = vmatprep.subr.mxu0 %v142_v44  ;;  %v402_v36 = vld [vmem:[#allocation7 + $0x18] sm:$0xff]  ;;  %v401_v37 = vld [vmem:[#allocation7 + $0x10] sm:$0xff]  ;;  %v400_v38 = vld [vmem:[#allocation7 + $0x8] sm:$0xff] }
  0x75   :  { %372 = vmatprep.subr.mxu1 %v206_v45  ;;  %296 = vmatpush2.msra.mxu0 %v141_v46  ;;  %v399_v39 = vld [vmem:[#allocation7] sm:$0xff]  ;;  %v462_v40 = vld [vmem:[#allocation7 + $0x1f8] sm:$0xff]  ;;  %v461_v41 = vld [vmem:[#allocation7 + $0x1f0] sm:$0xff] }
  0x76   :  { %373 = vmatpush2.msra.mxu1 %v205_v47  ;;  %297 = vmatprep.subr.mxu0 %v140_v48  ;;  %v460_v42 = vld [vmem:[#allocation7 + $0x1e8] sm:$0xff]  ;;  %v459_v43 = vld [vmem:[#allocation7 + $0x1e0] sm:$0xff]  ;;  %v458_v44 = vld [vmem:[#allocation7 + $0x1d8] sm:$0xff] }
  0x77   :  { %374 = vmatprep.subr.mxu1 %v204_v49  ;;  %298 = vmatpush2.msra.mxu0 %v139_v50  ;;  %v457_v45 = vld [vmem:[#allocation7 + $0x1d0] sm:$0xff]  ;;  %v456_v46 = vld [vmem:[#allocation7 + $0x1c8] sm:$0xff]  ;;  %v455_v47 = vld [vmem:[#allocation7 + $0x1c0] sm:$0xff] }
  0x78   :  { %375 = vmatpush2.msra.mxu1 %v203_v51  ;;  %299 = vmatprep.subr.mxu0 %v138_v52  ;;  %v454_v48 = vld [vmem:[#allocation7 + $0x1b8] sm:$0xff]  ;;  %v453_v49 = vld [vmem:[#allocation7 + $0x1b0] sm:$0xff]  ;;  %v452_v50 = vld [vmem:[#allocation7 + $0x1a8] sm:$0xff] }
  0x79   :  { %376 = vmatprep.subr.mxu1 %v202_v53  ;;  %300 = vmatpush2.msra.mxu0 %v137_v54  ;;  %v451_v51 = vld [vmem:[#allocation7 + $0x1a0] sm:$0xff]  ;;  %v450_v52 = vld [vmem:[#allocation7 + $0x198] sm:$0xff]  ;;  %v449_v53 = vld [vmem:[#allocation7 + $0x190] sm:$0xff] }
  0x7a   :  { %377 = vmatpush2.msra.mxu1 %v201_v55  ;;  %301 = vmatprep.subr.mxu0 %v136_v56  ;;  %v448_v54 = vld [vmem:[#allocation7 + $0x188] sm:$0xff]  ;;  %v447_v55 = vld [vmem:[#allocation7 + $0x180] sm:$0xff]  ;;  %v446_v56 = vld [vmem:[#allocation7 + $0x178] sm:$0xff] }
  0x7b   :  { %378 = vmatprep.subr.mxu1 %v200_v57  ;;  %302 = vmatpush2.msra.mxu0 %v135_v58  ;;  %v445_v57 = vld [vmem:[#allocation7 + $0x170] sm:$0xff]  ;;  %v444_v58 = vld [vmem:[#allocation7 + $0x168] sm:$0xff] }
  0x7c   :  { %379 = vmatpush2.msra.mxu1 %v199_v59  ;;  %303 = vmatprep.subr.mxu0 %v134_v60  ;;  %v443_v59 = vld [vmem:[#allocation7 + $0x160] sm:$0xff]  ;;  %v442_v60 = vld [vmem:[#allocation7 + $0x158] sm:$0xff] }
  0x7d   :  { %380 = vmatprep.subr.mxu1 %v198_v61  ;;  %304 = vmatpush2.msra.mxu0 %v133_v62  ;;  %v441_v61 = vld [vmem:[#allocation7 + $0x150] sm:$0xff]  ;;  %v440_v62 = vld [vmem:[#allocation7 + $0x148] sm:$0xff] }
  0x7e   :  { %305 = vmatprep.mubr.f32.mxu0 %v94_v63  ;;  %381 = vmatpush2.msra.mxu1 %v197_v0  ;;  %v439_v63 = vld [vmem:[#allocation7 + $0x140] sm:$0xff]  ;;  %v438_v0 = vld [vmem:[#allocation7 + $0x138] sm:$0xff] }
  0x7f   :  { %382 = vmatprep.mubr.f32.mxu1 %v96_v1  ;;  %306 = vmatmul.mubr.f32.vlgmr.msra.gmra.mxu0 %v93_v2  ;;  %v437_v1 = vld [vmem:[#allocation7 + $0x130] sm:$0xff]  ;;  %v436_v2 = vld [vmem:[#allocation7 + $0x128] sm:$0xff] }
  0x80   :  { %383 = vmatmul.mubr.f32.vlgmr.msra.gmra.mxu1 %v95_v3  ;;  %311 = vmatprep.mubr.f32.mxu0 %v98_v4  ;;  %v435_v3 = vld [vmem:[#allocation7 + $0x120] sm:$0xff]  ;;  %v434_v4 = vld [vmem:[#allocation7 + $0x118] sm:$0xff] }
  0x81   :  { %388 = vmatprep.mubr.f32.mxu1 %v100_v5  ;;  %475 = vmatprep.subr.mxu0 %v430_v6  ;;  %v433_v5 = vld [vmem:[#allocation7 + $0x110] sm:$0xff]  ;;  %v432_v6 = vld [vmem:[#allocation7 + $0x108] sm:$0xff] }
  0x82   :  { %476 = vmatpush1.msra.mxu0 %v429_v7  ;;  %v431_v7 = vld [vmem:[#allocation7 + $0x100] sm:$0xff] }
  0x83   :  { %312 = vmatmul.mubr.f32.gmra.mxu0 %v97_v8  ;;  %477 = vmatprep.subr.mxu0 %v428_v10  ;;  %v617_v8 = vld [vmem:[#allocation10 + $0x1e8] sm:$0xff]  ;;  %v1166_v10 = vld [vmem:[#allocation10 + $0x1f8] sm:$0xff] }
  0x84   :  { %389 = vmatmul.mubr.f32.gmra.mxu1 %v99_v9  ;;  %478 = vmatpush1.msra.mxu0 %v427_v11  ;;  %v616_v9 = vld [vmem:[#allocation10 + $0x1e0] sm:$0xff]  ;;  %v613_v11 = vld [vmem:[#allocation10 + $0x1c8] sm:$0xff] }
  0x85   :  { %479 = vmatprep.subr.mxu0 %v426_v12  ;;  %706 = vmatprep.subr.mxu1 %v617_v8  ;;  %v612_v12 = vld [vmem:[#allocation10 + $0x1c0] sm:$0xff] }
  0x86   :  { %480 = vmatpush1.msra.mxu0 %v425_v13  ;;  %707 = vmatpush1.msra.mxu1 %v616_v9  ;;  %v609_v13 = vld [vmem:[#allocation10 + $0x1a8] sm:$0xff] }
  0x87   :  { %481 = vmatprep.subr.mxu0 %v424_v14  ;;  %708 = vmatprep.subr.mxu1 %v613_v11  ;;  %v608_v14 = vld [vmem:[#allocation10 + $0x1a0] sm:$0xff] }
  0x88   :  { %482 = vmatpush1.msra.mxu0 %v423_v15  ;;  %709 = vmatpush1.msra.mxu1 %v612_v12  ;;  %v605_v15 = vld [vmem:[#allocation10 + $0x188] sm:$0xff] }
  0x89   :  { %483 = vmatprep.subr.mxu0 %v422_v16  ;;  %710 = vmatprep.subr.mxu1 %v609_v13  ;;  %v604_v16 = vld [vmem:[#allocation10 + $0x180] sm:$0xff] }
  0x8a   :  { %484 = vmatpush1.msra.mxu0 %v421_v17  ;;  %711 = vmatpush1.msra.mxu1 %v608_v14  ;;  %v601_v17 = vld [vmem:[#allocation10 + $0x168] sm:$0xff] }
  0x8b   :  { %485 = vmatprep.subr.mxu0 %v420_v18  ;;  %712 = vmatprep.subr.mxu1 %v605_v15  ;;  %v600_v18 = vld [vmem:[#allocation10 + $0x160] sm:$0xff] }
  0x8c   :  { %486 = vmatpush1.msra.mxu0 %v419_v19  ;;  %713 = vmatpush1.msra.mxu1 %v604_v16  ;;  %v597_v19 = vld [vmem:[#allocation10 + $0x148] sm:$0xff] }
  0x8d   :  { %487 = vmatprep.subr.mxu0 %v418_v20  ;;  %714 = vmatprep.subr.mxu1 %v601_v17  ;;  %v596_v20 = vld [vmem:[#allocation10 + $0x140] sm:$0xff] }
  0x8e   :  { %488 = vmatpush1.msra.mxu0 %v417_v21  ;;  %715 = vmatpush1.msra.mxu1 %v600_v18  ;;  %v593_v21 = vld [vmem:[#allocation10 + $0x128] sm:$0xff] }
  0x8f   :  { %489 = vmatprep.subr.mxu0 %v416_v22  ;;  %716 = vmatprep.subr.mxu1 %v597_v19  ;;  %v592_v22 = vld [vmem:[#allocation10 + $0x120] sm:$0xff] }
  0x90   :  { %490 = vmatpush1.msra.mxu0 %v415_v23  ;;  %717 = vmatpush1.msra.mxu1 %v596_v20  ;;  %v589_v23 = vld [vmem:[#allocation10 + $0x108] sm:$0xff] }
  0x91   :  { %491 = vmatprep.subr.mxu0 %v414_v24  ;;  %718 = vmatprep.subr.mxu1 %v593_v21  ;;  %v588_v24 = vld [vmem:[#allocation10 + $0x100] sm:$0xff] }
  0x92   :  { %492 = vmatpush1.msra.mxu0 %v413_v25  ;;  %719 = vmatpush1.msra.mxu1 %v592_v22  ;;  %v585_v25 = vld [vmem:[#allocation10 + $0xe8] sm:$0xff] }
  0x93   :  { %493 = vmatprep.subr.mxu0 %v412_v26  ;;  %720 = vmatprep.subr.mxu1 %v589_v23  ;;  %v584_v26 = vld [vmem:[#allocation10 + $0xe0] sm:$0xff] }
  0x94   :  { %494 = vmatpush1.msra.mxu0 %v411_v27  ;;  %721 = vmatpush1.msra.mxu1 %v588_v24  ;;  %v581_v27 = vld [vmem:[#allocation10 + $0xc8] sm:$0xff] }
  0x95   :  { %495 = vmatprep.subr.mxu0 %v410_v28  ;;  %722 = vmatprep.subr.mxu1 %v585_v25  ;;  %v580_v28 = vld [vmem:[#allocation10 + $0xc0] sm:$0xff] }
  0x96   :  { %496 = vmatpush1.msra.mxu0 %v409_v29  ;;  %723 = vmatpush1.msra.mxu1 %v584_v26  ;;  %v577_v29 = vld [vmem:[#allocation10 + $0xa8] sm:$0xff] }
  0x97   :  { %497 = vmatprep.subr.mxu0 %v408_v30  ;;  %724 = vmatprep.subr.mxu1 %v581_v27  ;;  %v576_v30 = vld [vmem:[#allocation10 + $0xa0] sm:$0xff]  ;;  %v1182_v27 = vld [vmem:[#allocation10 + $0x1f0] sm:$0xff] }
  0x98   :  { %498 = vmatpush1.msra.mxu0 %v407_v31  ;;  %725 = vmatpush1.msra.mxu1 %v580_v28  ;;  %v573_v31 = vld [vmem:[#allocation10 + $0x88] sm:$0xff] }
  0x99   :  { %499 = vmatprep.subr.mxu0 %v406_v32  ;;  %726 = vmatprep.subr.mxu1 %v577_v29  ;;  %v572_v32 = vld [vmem:[#allocation10 + $0x80] sm:$0xff]  ;;  %v1184_v29 = vld [vmem:[#allocation10 + $0x1d8] sm:$0xff] }
  0x9a   :  { %500 = vmatpush1.msra.mxu0 %v405_v33  ;;  %727 = vmatpush1.msra.mxu1 %v576_v30  ;;  %v569_v33 = vld [vmem:[#allocation10 + $0x68] sm:$0xff] }
  0x9b   :  { %501 = vmatprep.subr.mxu0 %v404_v34  ;;  %728 = vmatprep.subr.mxu1 %v573_v31  ;;  %v568_v34 = vld [vmem:[#allocation10 + $0x60] sm:$0xff]  ;;  %v1186_v31 = vld [vmem:[#allocation10 + $0x1d0] sm:$0xff] }
  0x9c   :  { %502 = vmatpush1.msra.mxu0 %v403_v35  ;;  %729 = vmatpush1.msra.mxu1 %v572_v32  ;;  %v565_v35 = vld [vmem:[#allocation10 + $0x48] sm:$0xff] }
  0x9d   :  { %503 = vmatprep.subr.mxu0 %v402_v36  ;;  %730 = vmatprep.subr.mxu1 %v569_v33  ;;  %v564_v36 = vld [vmem:[#allocation10 + $0x40] sm:$0xff]  ;;  %v1189_v33 = vld [vmem:[#allocation10 + $0x1b8] sm:$0xff] }
  0x9e   :  { %504 = vmatpush1.msra.mxu0 %v401_v37  ;;  %731 = vmatpush1.msra.mxu1 %v568_v34  ;;  %v561_v37 = vld [vmem:[#allocation10 + $0x28] sm:$0xff]  ;;  %v1192_v34 = vld [vmem:[#allocation10 + $0x1b0] sm:$0xff] }
  0x9f   :  { %505 = vmatprep.subr.mxu0 %v400_v38  ;;  %732 = vmatprep.subr.mxu1 %v565_v35  ;;  %v560_v38 = vld [vmem:[#allocation10 + $0x20] sm:$0xff]  ;;  %v1195_v35 = vld [vmem:[#allocation10 + $0x198] sm:$0xff] }
  0xa0   :  { %506 = vmatpush1.msra.mxu0 %v399_v39  ;;  %733 = vmatpush1.msra.mxu1 %v564_v36  ;;  %v557_v39 = vld [vmem:[#allocation10 + $0x8] sm:$0xff]  ;;  %v1198_v36 = vld [vmem:[#allocation10 + $0x190] sm:$0xff] }
  0xa1   :  { %507 = vmatprep.subr.mxu0 %v462_v40  ;;  %734 = vmatprep.subr.mxu1 %v561_v37  ;;  %v556_v40 = vld [vmem:[#allocation10] sm:$0xff]  ;;  %v1201_v37 = vld [vmem:[#allocation10 + $0x178] sm:$0xff] }
  0xa2   :  { %508 = vmatpush2.msra.mxu0 %v461_v41  ;;  %735 = vmatpush1.msra.mxu1 %v560_v38  ;;  %v681_v41 = vld [vmem:[#allocation10 + $0x3e8] sm:$0xff]  ;;  %v1204_v38 = vld [vmem:[#allocation10 + $0x170] sm:$0xff] }
  0xa3   :  { %509 = vmatprep.subr.mxu0 %v460_v42  ;;  %736 = vmatprep.subr.mxu1 %v557_v39  ;;  %v680_v42 = vld [vmem:[#allocation10 + $0x3e0] sm:$0xff]  ;;  %v1207_v39 = vld [vmem:[#allocation10 + $0x158] sm:$0xff] }
  0xa4   :  { %510 = vmatpush2.msra.mxu0 %v459_v43  ;;  %737 = vmatpush1.msra.mxu1 %v556_v40  ;;  %v677_v43 = vld [vmem:[#allocation10 + $0x3c8] sm:$0xff]  ;;  %v1210_v40 = vld [vmem:[#allocation10 + $0x150] sm:$0xff] }
  0xa5   :  { %511 = vmatprep.subr.mxu0 %v458_v44  ;;  %738 = vmatprep.subr.mxu1 %v681_v41  ;;  %v676_v44 = vld [vmem:[#allocation10 + $0x3c0] sm:$0xff]  ;;  %v1213_v41 = vld [vmem:[#allocation10 + $0x138] sm:$0xff] }
  0xa6   :  { %512 = vmatpush2.msra.mxu0 %v457_v45  ;;  %739 = vmatpush2.msra.mxu1 %v680_v42  ;;  %v673_v45 = vld [vmem:[#allocation10 + $0x3a8] sm:$0xff]  ;;  %v1216_v42 = vld [vmem:[#allocation10 + $0x130] sm:$0xff] }
  0xa7   :  { %513 = vmatprep.subr.mxu0 %v456_v46  ;;  %740 = vmatprep.subr.mxu1 %v677_v43  ;;  %v672_v46 = vld [vmem:[#allocation10 + $0x3a0] sm:$0xff]  ;;  %v1219_v43 = vld [vmem:[#allocation10 + $0x118] sm:$0xff] }
  0xa8   :  { %514 = vmatpush2.msra.mxu0 %v455_v47  ;;  %741 = vmatpush2.msra.mxu1 %v676_v44  ;;  %v669_v47 = vld [vmem:[#allocation10 + $0x388] sm:$0xff]  ;;  %v1222_v44 = vld [vmem:[#allocation10 + $0x110] sm:$0xff] }
  0xa9   :  { %515 = vmatprep.subr.mxu0 %v454_v48  ;;  %742 = vmatprep.subr.mxu1 %v673_v45  ;;  %v668_v48 = vld [vmem:[#allocation10 + $0x380] sm:$0xff]  ;;  %v1225_v45 = vld [vmem:[#allocation10 + $0xf8] sm:$0xff] }
  0xaa   :  { %516 = vmatpush2.msra.mxu0 %v453_v49  ;;  %743 = vmatpush2.msra.mxu1 %v672_v46  ;;  %v665_v49 = vld [vmem:[#allocation10 + $0x368] sm:$0xff]  ;;  %v1228_v46 = vld [vmem:[#allocation10 + $0xf0] sm:$0xff] }
  0xab   :  { %517 = vmatprep.subr.mxu0 %v452_v50  ;;  %744 = vmatprep.subr.mxu1 %v669_v47  ;;  %v664_v50 = vld [vmem:[#allocation10 + $0x360] sm:$0xff]  ;;  %v1231_v47 = vld [vmem:[#allocation10 + $0xd8] sm:$0xff] }
  0xac   :  { %518 = vmatpush2.msra.mxu0 %v451_v51  ;;  %745 = vmatpush2.msra.mxu1 %v668_v48  ;;  %v661_v51 = vld [vmem:[#allocation10 + $0x348] sm:$0xff]  ;;  %v1234_v48 = vld [vmem:[#allocation10 + $0xd0] sm:$0xff] }
  0xad   :  { %519 = vmatprep.subr.mxu0 %v450_v52  ;;  %746 = vmatprep.subr.mxu1 %v665_v49  ;;  %v660_v52 = vld [vmem:[#allocation10 + $0x340] sm:$0xff]  ;;  %v1237_v49 = vld [vmem:[#allocation10 + $0xb8] sm:$0xff] }
  0xae   :  { %520 = vmatpush2.msra.mxu0 %v449_v53  ;;  %747 = vmatpush2.msra.mxu1 %v664_v50  ;;  %v657_v53 = vld [vmem:[#allocation10 + $0x328] sm:$0xff]  ;;  %v1240_v50 = vld [vmem:[#allocation10 + $0xb0] sm:$0xff] }
  0xaf   :  { %521 = vmatprep.subr.mxu0 %v448_v54  ;;  %748 = vmatprep.subr.mxu1 %v661_v51  ;;  %v656_v54 = vld [vmem:[#allocation10 + $0x320] sm:$0xff]  ;;  %v1243_v51 = vld [vmem:[#allocation10 + $0x98] sm:$0xff] }
  0xb0   :  { %522 = vmatpush2.msra.mxu0 %v447_v55  ;;  %749 = vmatpush2.msra.mxu1 %v660_v52  ;;  %v653_v55 = vld [vmem:[#allocation10 + $0x308] sm:$0xff]  ;;  %v1246_v52 = vld [vmem:[#allocation10 + $0x90] sm:$0xff] }
  0xb1   :  { %523 = vmatprep.subr.mxu0 %v446_v56  ;;  %750 = vmatprep.subr.mxu1 %v657_v53  ;;  %v652_v56 = vld [vmem:[#allocation10 + $0x300] sm:$0xff]  ;;  %v1249_v53 = vld [vmem:[#allocation10 + $0x78] sm:$0xff] }
  0xb2   :  { %524 = vmatpush2.msra.mxu0 %v445_v57  ;;  %751 = vmatpush2.msra.mxu1 %v656_v54  ;;  %v649_v57 = vld [vmem:[#allocation10 + $0x2e8] sm:$0xff]  ;;  %v1252_v54 = vld [vmem:[#allocation10 + $0x70] sm:$0xff] }
  0xb3   :  { %525 = vmatprep.subr.mxu0 %v444_v58  ;;  %752 = vmatprep.subr.mxu1 %v653_v55  ;;  %v648_v58 = vld [vmem:[#allocation10 + $0x2e0] sm:$0xff]  ;;  %v1255_v55 = vld [vmem:[#allocation10 + $0x58] sm:$0xff] }
  0xb4   :  { %526 = vmatpush2.msra.mxu0 %v443_v59  ;;  %753 = vmatpush2.msra.mxu1 %v652_v56  ;;  %v645_v59 = vld [vmem:[#allocation10 + $0x2c8] sm:$0xff]  ;;  %v1258_v56 = vld [vmem:[#allocation10 + $0x50] sm:$0xff] }
  0xb5   :  { %527 = vmatprep.subr.mxu0 %v442_v60  ;;  %754 = vmatprep.subr.mxu1 %v649_v57  ;;  %v644_v60 = vld [vmem:[#allocation10 + $0x2c0] sm:$0xff]  ;;  %v1261_v57 = vld [vmem:[#allocation10 + $0x38] sm:$0xff] }
  0xb6   :  { %528 = vmatpush2.msra.mxu0 %v441_v61  ;;  %755 = vmatpush2.msra.mxu1 %v648_v58  ;;  %v641_v61 = vld [vmem:[#allocation10 + $0x2a8] sm:$0xff]  ;;  %v1264_v58 = vld [vmem:[#allocation10 + $0x30] sm:$0xff] }
  0xb7   :  { %529 = vmatprep.subr.mxu0 %v440_v62  ;;  %756 = vmatprep.subr.mxu1 %v645_v59  ;;  %v640_v62 = vld [vmem:[#allocation10 + $0x2a0] sm:$0xff]  ;;  %v1267_v59 = vld [vmem:[#allocation10 + $0x18] sm:$0xff] }
  0xb8   :  { %530 = vmatpush2.msra.mxu0 %v439_v63  ;;  %757 = vmatpush2.msra.mxu1 %v644_v60  ;;  %v637_v63 = vld [vmem:[#allocation10 + $0x288] sm:$0xff]  ;;  %v1270_v60 = vld [vmem:[#allocation10 + $0x10] sm:$0xff] }
  0xb9   :  { %531 = vmatprep.subr.mxu0 %v438_v0  ;;  %758 = vmatprep.subr.mxu1 %v641_v61  ;;  %v636_v0 = vld [vmem:[#allocation10 + $0x280] sm:$0xff]  ;;  %v1273_v61 = vld [vmem:[#allocation10 + $0x3f8] sm:$0xff] }
  0xba   :  { %532 = vmatpush2.msra.mxu0 %v437_v1  ;;  %759 = vmatpush2.msra.mxu1 %v640_v62  ;;  %v633_v1 = vld [vmem:[#allocation10 + $0x268] sm:$0xff]  ;;  %v1276_v62 = vld [vmem:[#allocation10 + $0x3f0] sm:$0xff] }
  0xbb   :  { %533 = vmatprep.subr.mxu0 %v436_v2  ;;  %760 = vmatprep.subr.mxu1 %v637_v63  ;;  %v231_v2 = vlaneseq  ;;  %v1279_v63 = vld [vmem:[#allocation10 + $0x3d8] sm:$0xff] }
  0xbc   :  { %534 = vmatpush2.msra.mxu0 %v435_v3  ;;  %761 = vmatpush2.msra.mxu1 %v636_v0  ;;  %v1282_v0 = vld [vmem:[#allocation10 + $0x3d0] sm:$0xff] }
  0xbd   :  { %535 = vmatprep.subr.mxu0 %v434_v4  ;;  %762 = vmatprep.subr.mxu1 %v633_v1  ;;  %v1169_v3 = vshrl.u32 %v231_v2, 7  ;;  %v1285_v1 = vld [vmem:[#allocation10 + $0x3b8] sm:$0xff]  ;;  %v1288_v2 = vld [vmem:[#allocation10 + $0x3b0] sm:$0xff] }
  0xbe   :  { %536 = vmatpush2.msra.mxu0 %v433_v5  ;;  %v229_v5 = vld [vmem:[%s1459_s2] sm:$0x3] }
  0xbf   :  { %537 = vmatprep.subr.mxu0 %v432_v6  ;;  %1482 = vst [vmem:[#allocation16_spill] sm:$0xff] %v1169_v3  ;;  %v1172_v4 = vsub.s32 0, %v1169_v3  ;;  %v1178_v6 = vsub.s32 1, %v1169_v3  ;;  %v1353_v3 = vld [vmem:[#allocation10 + $0x258] sm:$0xff] }
  0xc0   :  { %538 = vmatpush2.msra.mxu0 %v431_v7  ;;  %1492 = vst [vmem:[#allocation26_spill] sm:$0xff] %v1353_v3 }
  0xc1   :  { %783 = vmatprep.subr.mxu0 %v1166_v10  ;;  %v234_v7 = vrot.slane %v229_v5, %v1172_v4  ;;  %v238_v8 = vrot.slane %v229_v5, %v1178_v6  ;;  %v1291_v5 = vld [vmem:[#allocation10 + $0x398] sm:$0xff] }
 0x13f   :  { %v307_v9 = vpop.f32.mrf.mxu0 }
 0x140   :  { %v384_v11 = vpop.f32.mrf.mxu1  ;;  %v308_v12 = vadd.f32 %v307_v9, %v234_v7  ;;  %v1300_v9 = vld [vmem:[#allocation10 + $0x370] sm:$0xff] }
 0x141   :  { %v309_v13 = vpop.f32.mrf.mxu0 }
 0x142   :  { %v386_v14 = vpop.f32.mrf.mxu1  ;;  %v310_v15 = vadd.f32 %v309_v13, %v238_v8  ;;  %v385_v16 = vadd.f32 %v384_v11, %v308_v12  ;;  %v1303_v11 = vld [vmem:[#allocation10 + $0x358] sm:$0xff]  ;;  %v1306_v12 = vld [vmem:[#allocation10 + $0x350] sm:$0xff] }
 0x143   :  { %v313_v17 = vpop.f32.mrf.mxu0  ;;  %v1309_v13 = vld [vmem:[#allocation10 + $0x338] sm:$0xff] }
 0x144   :  { %v390_v18 = vpop.f32.mrf.mxu1  ;;  %v387_v19 = vadd.f32 %v386_v14, %v310_v15  ;;  %v314_v20 = vadd.f32 %v313_v17, %v234_v7  ;;  %v395_v26 = vmax.f32 %v385_v16, 0.0  ;;  %v1294_v7 = vld [vmem:[#allocation10 + $0x390] sm:$0xff]  ;;  %v1315_v15 = vld [vmem:[#allocation10 + $0x318] sm:$0xff] }
 0x145   :  { %v315_v21 = vpop.f32.mrf.mxu0  ;;  %v1312_v14 = vld [vmem:[#allocation10 + $0x330] sm:$0xff]  ;;  %v1321_v17 = vld [vmem:[#allocation10 + $0x2f8] sm:$0xff] }
 0x146   :  { %v392_v22 = vpop.f32.mrf.mxu1  ;;  %v396_v23 = vmax.f32 %v387_v19, 0.0  ;;  %v316_v24 = vadd.f32 %v315_v21, %v238_v8  ;;  %v391_v25 = vadd.f32 %v390_v18, %v314_v20  ;;  %v1297_v8 = vld [vmem:[#allocation10 + $0x378] sm:$0xff]  ;;  %v1318_v16 = vld [vmem:[#allocation10 + $0x310] sm:$0xff] }
 0x147   :  { %v1324_v18 = vld [vmem:[#allocation10 + $0x2f0] sm:$0xff]  ;;  %v1327_v19 = vld [vmem:[#allocation10 + $0x2d8] sm:$0xff] }
 0x148   :  { %539 = vmatprep.mubr.f32.mxu0 %v396_v23  ;;  %v393_v28 = vadd.f32 %v392_v22, %v316_v24  ;;  %v397_v30 = vmax.f32 %v391_v25, 0.0  ;;  %1483 = vst [vmem:[#allocation17_spill] sm:$0xff] %v1324_v18  ;;  %1484 = vst [vmem:[#allocation18_spill] sm:$0xff] %v1327_v19  ;;  %v1330_v20 = vld [vmem:[#allocation10 + $0x2d0] sm:$0xff]  ;;  %v1333_v21 = vld [vmem:[#allocation10 + $0x2b8] sm:$0xff] }
 0x149   :  { %540 = vmatmul.mubr.f32.vlgmr.msra.gmra.mxu0 %v395_v26  ;;  %1485 = vst [vmem:[#allocation19_spill] sm:$0xff] %v1330_v20  ;;  %1486 = vst [vmem:[#allocation20_spill] sm:$0xff] %v1333_v21  ;;  %v1336_v22 = vld [vmem:[#allocation10 + $0x2b0] sm:$0xff]  ;;  %v1339_v23 = vld [vmem:[#allocation10 + $0x298] sm:$0xff] }
 0x14a   :  { %v398_v32 = vmax.f32 %v393_v28, 0.0  ;;  %784 = vmatpush1.msra.mxu0 %v1182_v27  ;;  %1487 = vst [vmem:[#allocation21_spill] sm:$0xff] %v1336_v22  ;;  %1488 = vst [vmem:[#allocation22_spill] sm:$0xff] %v1339_v23  ;;  %v1342_v24 = vld [vmem:[#allocation10 + $0x290] sm:$0xff]  ;;  %v632_v25 = vld [vmem:[#allocation10 + $0x260] sm:$0xff] }
 0x14b   :  { %785 = vmatprep.subr.mxu0 %v1184_v29  ;;  %1489 = vst [vmem:[#allocation23_spill] sm:$0xff] %v1342_v24  ;;  %v1347_v26 = vld [vmem:[#allocation10 + $0x278] sm:$0xff]  ;;  %763 = vmatpush2.msra.mxu1 %v632_v25  ;;  %v629_v28 = vld [vmem:[#allocation10 + $0x248] sm:$0xff]  ;;  %v624_v25 = vld [vmem:[#allocation10 + $0x220] sm:$0xff] }
 0x14c   :  { %545 = vmatprep.mubr.f32.mxu0 %v398_v32  ;;  %786 = vmatpush1.msra.mxu0 %v1186_v31  ;;  %1490 = vst [vmem:[#allocation24_spill] sm:$0xff] %v1347_v26  ;;  %v628_v32 = vld [vmem:[#allocation10 + $0x240] sm:$0xff] }
 0x14d   :  { %546 = vmatmul.mubr.f32.gmra.mxu0 %v397_v30  ;;  %787 = vmatprep.subr.mxu0 %v1189_v33  ;;  %v1350_v30 = vld [vmem:[#allocation10 + $0x270] sm:$0xff] }
 0x14e   :  { %788 = vmatpush1.msra.mxu0 %v1192_v34  ;;  %1491 = vst [vmem:[#allocation25_spill] sm:$0xff] %v1350_v30  ;;  %764 = vmatprep.subr.mxu1 %v629_v28  ;;  %v621_v28 = vld [vmem:[#allocation10 + $0x208] sm:$0xff] }
 0x14f   :  { %789 = vmatprep.subr.mxu0 %v1195_v35  ;;  %765 = vmatpush2.msra.mxu1 %v628_v32  ;;  %v620_v32 = vld [vmem:[#allocation10 + $0x200] sm:$0xff] }
 0x150   :  { %790 = vmatpush1.msra.mxu0 %v1198_v36 }
 0x151   :  { %791 = vmatprep.subr.mxu0 %v1201_v37 }
 0x152   :  { %792 = vmatpush1.msra.mxu0 %v1204_v38 }
 0x153   :  { %793 = vmatprep.subr.mxu0 %v1207_v39 }
 0x154   :  { %794 = vmatpush1.msra.mxu0 %v1210_v40 }
 0x155   :  { %795 = vmatprep.subr.mxu0 %v1213_v41 }
 0x156   :  { %796 = vmatpush1.msra.mxu0 %v1216_v42 }
 0x157   :  { %797 = vmatprep.subr.mxu0 %v1219_v43 }
 0x158   :  { %798 = vmatpush1.msra.mxu0 %v1222_v44 }
 0x159   :  { %799 = vmatprep.subr.mxu0 %v1225_v45 }
 0x15a   :  { %800 = vmatpush1.msra.mxu0 %v1228_v46 }
 0x15b   :  { %801 = vmatprep.subr.mxu0 %v1231_v47 }
 0x15c   :  { %802 = vmatpush1.msra.mxu0 %v1234_v48 }
 0x15d   :  { %803 = vmatprep.subr.mxu0 %v1237_v49 }
 0x15e   :  { %804 = vmatpush1.msra.mxu0 %v1240_v50 }
 0x15f   :  { %805 = vmatprep.subr.mxu0 %v1243_v51 }
 0x160   :  { %806 = vmatpush1.msra.mxu0 %v1246_v52 }
 0x161   :  { %807 = vmatprep.subr.mxu0 %v1249_v53 }
 0x162   :  { %808 = vmatpush1.msra.mxu0 %v1252_v54 }
 0x163   :  { %809 = vmatprep.subr.mxu0 %v1255_v55 }
 0x164   :  { %810 = vmatpush1.msra.mxu0 %v1258_v56 }
 0x165   :  { %811 = vmatprep.subr.mxu0 %v1261_v57 }
 0x166   :  { %812 = vmatpush1.msra.mxu0 %v1264_v58 }
 0x167   :  { %813 = vmatprep.subr.mxu0 %v1267_v59 }
 0x168   :  { %814 = vmatpush1.msra.mxu0 %v1270_v60 }
 0x169   :  { %815 = vmatprep.subr.mxu0 %v1273_v61 }
 0x16a   :  { %816 = vmatpush2.msra.mxu0 %v1276_v62 }
 0x16b   :  { %817 = vmatprep.subr.mxu0 %v1279_v63 }
 0x16c   :  { %818 = vmatpush2.msra.mxu0 %v1282_v0 }
 0x16d   :  { %819 = vmatprep.subr.mxu0 %v1285_v1 }
 0x16e   :  { %820 = vmatpush2.msra.mxu0 %v1288_v2 }
 0x16f   :  { %821 = vmatprep.subr.mxu0 %v1291_v5 }
 0x170   :  { %822 = vmatpush2.msra.mxu0 %v1294_v7 }
 0x171   :  { %823 = vmatprep.subr.mxu0 %v1297_v8 }
 0x172   :  { %824 = vmatpush2.msra.mxu0 %v1300_v9 }
 0x173   :  { %825 = vmatprep.subr.mxu0 %v1303_v11 }
 0x174   :  { %826 = vmatpush2.msra.mxu0 %v1306_v12 }
 0x175   :  { %827 = vmatprep.subr.mxu0 %v1309_v13 }
 0x176   :  { %828 = vmatpush2.msra.mxu0 %v1312_v14 }
 0x177   :  { %829 = vmatprep.subr.mxu0 %v1315_v15 }
 0x178   :  { %830 = vmatpush2.msra.mxu0 %v1318_v16 }
 0x179   :  { %831 = vmatprep.subr.mxu0 %v1321_v17 }
 0x17a   :  { %832 = vmatpush2.msra.mxu0 %v1324_v18 }
 0x17b   :  { %833 = vmatprep.subr.mxu0 %v1327_v19 }
 0x17c   :  { %834 = vmatpush2.msra.mxu0 %v1330_v20 }
 0x17d   :  { %835 = vmatprep.subr.mxu0 %v1333_v21 }
 0x17e   :  { %836 = vmatpush2.msra.mxu0 %v1336_v22 }
 0x17f   :  { %837 = vmatprep.subr.mxu0 %v1339_v23  ;;  %v625_v23 = vld [vmem:[#allocation10 + $0x228] sm:$0xff] }
 0x180   :  { %838 = vmatpush2.msra.mxu0 %v1342_v24  ;;  %v1356_v24 = vld [vmem:[#allocation10 + $0x250] sm:$0xff]  ;;  %766 = vmatprep.subr.mxu1 %v625_v23 }
 0x181   :  { %839 = vmatprep.subr.mxu0 %v1347_v26  ;;  %1493 = vst [vmem:[#allocation27_spill] sm:$0xff] %v1356_v24  ;;  %v1359_v26 = vld [vmem:[#allocation10 + $0x238] sm:$0xff]  ;;  %767 = vmatpush2.msra.mxu1 %v624_v25  ;;  %v1368_v23 = vld [vmem:[#allocation10 + $0x210] sm:$0xff] }
 0x182   :  { %840 = vmatpush2.msra.mxu0 %v1350_v30  ;;  %1494 = vst [vmem:[#allocation28_spill] sm:$0xff] %v1359_v26  ;;  %v1362_v30 = vld [vmem:[#allocation10 + $0x230] sm:$0xff]  ;;  %768 = vmatprep.subr.mxu1 %v621_v28  ;;  %1497 = vst [vmem:[#allocation31_spill] sm:$0xff] %v1368_v23  ;;  %v463_v25 = vld [vmem:[#allocation8] sm:$0x3] }
 0x183   :  { %841 = vmatprep.subr.mxu0 %v1353_v3  ;;  %1495 = vst [vmem:[#allocation29_spill] sm:$0xff] %v1362_v30  ;;  %v1365_v3 = vld [vmem:[#allocation10 + $0x218] sm:$0xff]  ;;  %769 = vmatpush2.msra.mxu1 %v620_v32 }
 0x184   :  { %842 = vmatpush2.msra.mxu0 %v1356_v24  ;;  %1496 = vst [vmem:[#allocation30_spill] sm:$0xff] %v1365_v3  ;;  %887 = vmatprep.subr.mxu1 %v1166_v10  ;;  %v472_v24 = vrot.slane %v463_v25, %v1178_v6 }
 0x185   :  { %843 = vmatprep.subr.mxu0 %v1359_v26  ;;  %v468_v26 = vrot.slane %v463_v25, %v1172_v4 }
 0x186   :  { %844 = vmatpush2.msra.mxu0 %v1362_v30 }
 0x187   :  { %845 = vmatprep.subr.mxu0 %v1365_v3 }
 0x188   :  { %846 = vmatpush2.msra.mxu0 %v1368_v23 }
 0x209   :  { %v541_v28 = vpop.f32.mrf.mxu0 }
 0x20a   :  { %v542_v22 = vadd.f32 %v541_v28, %v468_v26 }
 0x20b   :  { %v543_v30 = vpop.f32.mrf.mxu0 }
 0x20c   :  { %v544_v21 = vadd.f32 %v543_v30, %v472_v24  ;;  %v552_v3 = vmax.f32 %v542_v22, 0.0 }
 0x20d   :  { %v547_v20 = vpop.f32.mrf.mxu0 }
 0x20e   :  { %v553_v19 = vmax.f32 %v544_v21, 0.0  ;;  %v1374_v32 = vadd.f32 %v547_v20, %v468_v26 }
 0x20f   :  { %v549_v18 = vpop.f32.mrf.mxu0 }
 0x210   :  { %770 = vmatprep.mubr.f32.mxu1 %v553_v19  ;;  %847 = vmatprep.mubr.f32.mxu0 %v553_v19  ;;  %v550_v10 = vadd.f32 %v549_v18, %v472_v24  ;;  %v554_v23 = vmax.f32 %v1374_v32, 0.0 }
 0x211   :  { %771 = vmatmul.mubr.f32.vlgmr.msra.gmra.mxu1 %v552_v3  ;;  %848 = vmatmul.mubr.f32.vlgmr.msra.gmra.mxu0 %v552_v3  ;;  %v1498_v3 = vld [vmem:[#allocation17_spill] sm:$0xff] }
 0x212   :  { %919 = vmatpush1.msra.mxu1 %v1182_v27  ;;  %v555_v25 = vmax.f32 %v550_v10, 0.0  ;;  %v1499_v27 = vld [vmem:[#allocation18_spill] sm:$0xff] }
 0x213   :  { %888 = vmatprep.subr.mxu1 %v1184_v29  ;;  %v1500_v29 = vld [vmem:[#allocation19_spill] sm:$0xff] }
 0x214   :  { %920 = vmatpush1.msra.mxu1 %v1186_v31  ;;  %776 = vmatprep.mubr.f32.mxu1 %v555_v25  ;;  %v1501_v31 = vld [vmem:[#allocation20_spill] sm:$0xff] }
 0x215   :  { %889 = vmatprep.subr.mxu1 %v1189_v33  ;;  %777 = vmatmul.mubr.f32.gmra.mxu1 %v554_v23  ;;  %v1502_v33 = vld [vmem:[#allocation21_spill] sm:$0xff] }
 0x216   :  { %921 = vmatpush1.msra.mxu1 %v1192_v34  ;;  %853 = vmatprep.mubr.f32.mxu1 %v555_v25  ;;  %v1503_v34 = vld [vmem:[#allocation22_spill] sm:$0xff] }
 0x217   :  { %890 = vmatprep.subr.mxu1 %v1195_v35  ;;  %v1504_v35 = vld [vmem:[#allocation23_spill] sm:$0xff] }
 0x218   :  { %922 = vmatpush1.msra.mxu1 %v1198_v36  ;;  %v1505_v36 = vld [vmem:[#allocation24_spill] sm:$0xff] }
 0x219   :  { %891 = vmatprep.subr.mxu1 %v1201_v37  ;;  %v1506_v37 = vld [vmem:[#allocation25_spill] sm:$0xff] }
 0x21a   :  { %923 = vmatpush1.msra.mxu1 %v1204_v38  ;;  %v1507_v38 = vld [vmem:[#allocation26_spill] sm:$0xff] }
 0x21b   :  { %892 = vmatprep.subr.mxu1 %v1207_v39  ;;  %v1508_v39 = vld [vmem:[#allocation27_spill] sm:$0xff] }
 0x21c   :  { %924 = vmatpush1.msra.mxu1 %v1210_v40  ;;  %v1509_v40 = vld [vmem:[#allocation28_spill] sm:$0xff] }
 0x21d   :  { %893 = vmatprep.subr.mxu1 %v1213_v41  ;;  %v1510_v41 = vld [vmem:[#allocation29_spill] sm:$0xff] }
 0x21e   :  { %925 = vmatpush1.msra.mxu1 %v1216_v42  ;;  %v1511_v42 = vld [vmem:[#allocation30_spill] sm:$0xff] }
 0x21f   :  { %894 = vmatprep.subr.mxu1 %v1219_v43  ;;  %v1512_v43 = vld [vmem:[#allocation31_spill] sm:$0xff] }
 0x220   :  { %926 = vmatpush1.msra.mxu1 %v1222_v44  ;;  %v1513_v44 = vld [vmem:[#allocation16_spill] sm:$0xff] }
 0x221   :  { %895 = vmatprep.subr.mxu1 %v1225_v45  ;;  %v696_v45 = vsub.s32 2, %v1513_v44 }
 0x222   :  { %927 = vmatpush1.msra.mxu1 %v1228_v46  ;;  %v684_v46 = vld [vmem:[%s1463_s6] sm:$0xf]  ;;  %s1098_s6 = smov [#allocation11]  }
 0x223   :  { %896 = vmatprep.subr.mxu1 %v1231_v47  ;;  %v700_v47 = vsub.s32 3, %v1513_v44  ;;  %s873_s28 = sshll.u32 %s1098_s6, 4  ;;  %s874_s28 = int_to_ptr.vmem [resolvable:$true] %s873_s28 }
 0x224   :  { %928 = vmatpush1.msra.mxu1 %v1234_v48  ;;  %v689_v48 = vrot.slane %v684_v46, %v1172_v4  ;;  %s1061_s29 = scalar_lea.vmem %s874_s28, 1024  ;;  %p1066_p12 = scmp.lt.s32.totalorder %s874_s28, %s874_s28 }
 0x225   :  { %897 = vmatprep.subr.mxu1 %v1237_v49  ;;  %v697_v49 = vrot.slane %v684_v46, %v696_v45  ;;  %p1062_p11 = scmp.ne.s32.totalorder %s874_s28, %s1061_s29  ;;  %p1067_p13 = scmp.lt.s32.totalorder %s1061_s29, %s1061_s29 }
 0x226   :  { %929 = vmatpush1.msra.mxu1 %v1240_v50  ;;  %v693_v50 = vrot.slane %v684_v46, %v1178_v6 }
 0x227   :  { %898 = vmatprep.subr.mxu1 %v1243_v51  ;;  %v701_v51 = vrot.slane %v684_v46, %v700_v47  ;;  %p1068_p0 = por %p1067_p13, %p1066_p12 }
 0x228   :  { %930 = vmatpush1.msra.mxu1 %v1246_v52 }
 0x229   :  { %899 = vmatprep.subr.mxu1 %v1249_v53  ;;  %p1069_p1 = pnand %p1068_p0, %p1062_p11 }
 0x22a   :  { %931 = vmatpush1.msra.mxu1 %v1252_v54 }
 0x22b   :  { %900 = vmatprep.subr.mxu1 %v1255_v55 }
 0x22c   :  { %932 = vmatpush1.msra.mxu1 %v1258_v56 }
 0x22d   :  { %901 = vmatprep.subr.mxu1 %v1261_v57 }
 0x22e   :  { %933 = vmatpush1.msra.mxu1 %v1264_v58 }
 0x22f   :  { %902 = vmatprep.subr.mxu1 %v1267_v59 }
 0x230   :  { %934 = vmatpush1.msra.mxu1 %v1270_v60 }
 0x231   :  { %903 = vmatprep.subr.mxu1 %v1273_v61 }
 0x232   :  { %935 = vmatpush2.msra.mxu1 %v1276_v62 }
 0x233   :  { %904 = vmatprep.subr.mxu1 %v1279_v63 }
 0x234   :  { %936 = vmatpush2.msra.mxu1 %v1282_v0 }
 0x235   :  { %905 = vmatprep.subr.mxu1 %v1285_v1 }
 0x236   :  { %937 = vmatpush2.msra.mxu1 %v1288_v2 }
 0x237   :  { %906 = vmatprep.subr.mxu1 %v1291_v5 }
 0x238   :  { %938 = vmatpush2.msra.mxu1 %v1294_v7 }
 0x239   :  { %907 = vmatprep.subr.mxu1 %v1297_v8 }
 0x23a   :  { %939 = vmatpush2.msra.mxu1 %v1300_v9 }
 0x23b   :  { %908 = vmatprep.subr.mxu1 %v1303_v11 }
 0x23c   :  { %940 = vmatpush2.msra.mxu1 %v1306_v12 }
 0x23d   :  { %909 = vmatprep.subr.mxu1 %v1309_v13 }
 0x23e   :  { %941 = vmatpush2.msra.mxu1 %v1312_v14 }
 0x23f   :  { %910 = vmatprep.subr.mxu1 %v1315_v15 }
 0x240   :  { %942 = vmatpush2.msra.mxu1 %v1318_v16 }
 0x241   :  { %911 = vmatprep.subr.mxu1 %v1321_v17 }
 0x242   :  { %943 = vmatpush2.msra.mxu1 %v1498_v3 }
 0x243   :  { %912 = vmatprep.subr.mxu1 %v1499_v27 }
 0x244   :  { %944 = vmatpush2.msra.mxu1 %v1500_v29 }
 0x245   :  { %913 = vmatprep.subr.mxu1 %v1501_v31 }
 0x246   :  { %945 = vmatpush2.msra.mxu1 %v1502_v33 }
 0x247   :  { %914 = vmatprep.subr.mxu1 %v1503_v34 }
 0x248   :  { %946 = vmatpush2.msra.mxu1 %v1504_v35 }
 0x249   :  { %915 = vmatprep.subr.mxu1 %v1505_v36 }
 0x24a   :  { %947 = vmatpush2.msra.mxu1 %v1506_v37 }
 0x24b   :  { %916 = vmatprep.subr.mxu1 %v1507_v38 }
 0x24c   :  { %948 = vmatpush2.msra.mxu1 %v1508_v39 }
 0x24d   :  { %917 = vmatprep.subr.mxu1 %v1509_v40 }
 0x24e   :  { %949 = vmatpush2.msra.mxu1 %v1510_v41 }
 0x24f   :  { %918 = vmatprep.subr.mxu1 %v1511_v42 }
 0x250   :  { %950 = vmatpush2.msra.mxu1 %v1512_v43 }
 0x251   :  { %854 = vmatmul.mubr.f32.vlgmr.msra.gmra.mxu1 %v554_v23 }
 0x2d1   :  { %v772_v52 = vpop.f32.mrf.mxu1  ;;  %v849_v53 = vpop.f32.mrf.mxu0 }
 0x2d2   :  { %v773_v54 = vadd.f32 %v772_v52, %v689_v48  ;;  %v850_v55 = vadd.f32 %v849_v53, %v697_v49 }
 0x2d3   :  { %v774_v56 = vpop.f32.mrf.mxu1  ;;  %v851_v57 = vpop.f32.mrf.mxu0 }
 0x2d4   :  { %860 = vst [vmem:[#allocation11] sm:$0xff] %v773_v54  ;;  %862 = vst [vmem:[#allocation11 + $0x10] sm:$0xff] %v850_v55  ;;  %v775_v58 = vadd.f32 %v774_v56, %v693_v50  ;;  %v852_v59 = vadd.f32 %v851_v57, %v701_v51 }
 0x2d5   :  { %v778_v60 = vpop.f32.mrf.mxu1 }
 0x2d6   :  { %861 = vst [vmem:[#allocation11 + $0x8] sm:$0xff] %v775_v58  ;;  %863 = vst [vmem:[#allocation11 + $0x18] sm:$0xff] %v852_v59  ;;  %v779_v61 = vadd.f32 %v778_v60, %v689_v48 }
 0x2d7   :  { %v780_v62 = vpop.f32.mrf.mxu1 }
 0x2d8   :  { %864 = vst [vmem:[#allocation11 + $0x20] sm:$0xff] %v779_v61  ;;  %v781_v4 = vadd.f32 %v780_v62, %v693_v50 }
 0x2da   :  { %865 = vst [vmem:[#allocation11 + $0x28] sm:$0xff] %v781_v4 }
 0x311   :  { %v855_v6 = vpop.f32.mrf.mxu1 }
 0x312   :  { %v856_v63 = vadd.f32 %v855_v6, %v697_v49 }
 0x313   :  { %v857_v0 = vpop.f32.mrf.mxu1 }
 0x314   :  { %866 = vst [vmem:[#allocation11 + $0x30] sm:$0xff] %v856_v63  ;;  %v858_v1 = vadd.f32 %v857_v0, %v701_v51 }
 0x316   :  { %867 = vst [vmem:[#allocation11 + $0x38] sm:$0xff] %v858_v1 }
 0x317   :  { %1072 = shalt.err (!%p1069_p1)
}
 0x318   :  { %879 = dma.vmem_to_hbm [thread:$0]  %s874_s28, 1024, %s1464_s7, [#allocation4], %s1094_s1, %s1094_s1, %s1095_s16  }
 0x319   :  { %1087 = dma.done.wait [#allocation4], 1024  }
 0x31a   :  { %1088 = vsyncadd [#allocation4], 4294966272 }
 0x31b   :  { %883 = vsyncpa [#allocation3], 1 }
 0x31c   :  { %884 = vsyncpa [#allocation6], 1 }
 0x31d   :  { %885 = vsyncpa [#allocation9], 1 }
 0x31e   :  { %886 = vsyncpa [#allocation4], 1 }

// kernel: tpu_custom_call.1
= control target key start
LH: loop header
LB: loop body
LE: loop exit
PB: predicated region body
PF: predicated region fallthrough
CT: control target
= control target key end

     0   :  { %12 = vsyncpa [#allocation3], 0  ;;  %s1457_s0 = inlined_call_operand.hbm [shape: f32[16,512], index: 0, kind: input, shape index: {}]   ;;  %s1458_s1 = inlined_call_operand.hbm [shape: f32[512,256], index: 1, kind: input, shape index: {}]   ;;  %s1459_s2 = inlined_call_operand.vmem [shape: f32[1,256], index: 2, kind: input, shape index: {}]   ;;  %s1460_s3 = inlined_call_operand.hbm [shape: f32[256,256], index: 3, kind: input, shape index: {}]   ;;  %s1461_s4 = inlined_call_operand.hbm [shape: f32[1,256], index: 4, kind: input, shape index: {}]   ;;  %s1462_s5 = inlined_call_operand.hbm [shape: f32[256,512], index: 5, kind: input, shape index: {}]   ;;  %s1463_s6 = inlined_call_operand.vmem [shape: f32[1,512], index: 6, kind: input, shape index: {}]   ;;  %s1464_s7 = inlined_call_operand.hbm [shape: f32[16,512], index: 7, kind: output, shape index: {}]  }
   0x1   :  { %13 = vsyncpa [#allocation6], 0 }
   0x2   :  { %14 = vsyncpa [#allocation9], 0 }
   0x3   :  { %15 = vsyncpa [#allocation4], 0  ;;  %s1089_s24 = smov [#allocation5]  }
   0x4   :  { %s33_s25 = sshll.u32 %s1089_s24, 4  ;;  %s34_s25 = int_to_ptr.vmem [resolvable:$true] %s33_s25 }
   0x5   :  { %s969_s26 = scalar_lea.vmem %s34_s25, 16384  ;;  %p974_p1 = scmp.lt.s32.totalorder %s34_s25, %s34_s25 }
   0x6   :  { %p970_p0 = scmp.ne.s32.totalorder %s34_s25, %s969_s26  ;;  %p975_p2 = scmp.lt.s32.totalorder %s969_s26, %s969_s26 }
   0x8   :  { %p976_p3 = por %p975_p2, %p974_p1 }
   0xa   :  { %p977_p4 = pnand %p976_p3, %p970_p0 }
   0xc   :  { %980 = shalt.err (!%p977_p4)
}
   0xd   :  { %s1090_s27 = smov 256   ;;  %s1091_s28 = smov 16  }
   0xe   :  { %39 = dma.hbm_to_vmem [thread:$0]  %s1458_s1, 16384, %s34_s25, [#allocation6], %s1090_s27, %s1090_s27, %s1091_s28  }
   0xf   :  { %s1092_s8 = smov [#allocation8]   ;;  %s1093_s10 = smov [#allocation2]  }
  0x10   :  { %s60_s9 = sshll.u32 %s1092_s8, 4  ;;  %s21_s11 = sshll.u32 %s1093_s10, 4  ;;  %s61_s9 = int_to_ptr.vmem [resolvable:$true] %s60_s9  ;;  %s22_s11 = int_to_ptr.vmem [resolvable:$true] %s21_s11 }
  0x11   :  { %s989_s12 = scalar_lea.vmem %s61_s9, 32  ;;  %p994_p6 = scmp.lt.s32.totalorder %s61_s9, %s61_s9 }
  0x12   :  { %p990_p5 = scmp.ne.s32.totalorder %s61_s9, %s989_s12  ;;  %p995_p7 = scmp.lt.s32.totalorder %s989_s12, %s989_s12 }
  0x14   :  { %p996_p8 = por %p995_p7, %p994_p6 }
  0x16   :  { %p997_p9 = pnand %p996_p8, %p990_p5 }
  0x18   :  { %1000 = shalt.err (!%p997_p9)
}
  0x19   :  { %63 = dma.hbm_to_vmem [thread:$0]  %s1461_s4, 32, %s61_s9, [#allocation9]  }
  0x1a   :  { %s1009_s15 = scalar_lea.vmem %s22_s11, 1024  ;;  %p1014_p11 = scmp.lt.s32.totalorder %s22_s11, %s22_s11 }
  0x1b   :  { %p1010_p10 = scmp.ne.s32.totalorder %s22_s11, %s1009_s15  ;;  %p1015_p12 = scmp.lt.s32.totalorder %s1009_s15, %s1009_s15 }
  0x1d   :  { %p1016_p13 = por %p1015_p12, %p1014_p11 }
  0x1f   :  { %p1017_p0 = pnand %p1016_p13, %p1010_p10 }
  0x21   :  { %1020 = shalt.err (!%p1017_p0)
}
  0x22   :  { %s1094_s1 = smov 512   ;;  %s1095_s16 = smov 32  }
  0x23   :  { %27 = dma.hbm_to_vmem [thread:$0]  %s1457_s0, 1024, %s22_s11, [#allocation3], %s1094_s1, %s1094_s1, %s1095_s16  }
  0x24   :  { %s1096_s19 = smov [#allocation7]   ;;  %s1097_s4 = smov [#allocation10]  }
  0x25   :  { %s47_s20 = sshll.u32 %s1096_s19, 4  ;;  %s69_s21 = sshll.u32 %s1097_s4, 4  ;;  %s48_s20 = int_to_ptr.vmem [resolvable:$true] %s47_s20  ;;  %s70_s21 = int_to_ptr.vmem [resolvable:$true] %s69_s21 }
  0x26   :  { %s1029_s22 = scalar_lea.vmem %s48_s20, 8192  ;;  %p1034_p2 = scmp.lt.s32.totalorder %s48_s20, %s48_s20 }
  0x27   :  { %p1030_p1 = scmp.ne.s32.totalorder %s48_s20, %s1029_s22  ;;  %p1035_p3 = scmp.lt.s32.totalorder %s1029_s22, %s1029_s22 }
  0x29   :  { %p1036_p4 = por %p1035_p3, %p1034_p2 }
  0x2b   :  { %p1037_p5 = pnand %p1036_p4, %p1030_p1 }
  0x2d   :  { %1040 = shalt.err (!%p1037_p5)
}
  0x2e   :  { %53 = dma.hbm_to_vmem [thread:$0]  %s1460_s3, 8192, %s48_s20, [#allocation6], %s1090_s27, %s1090_s27, %s1091_s28  }
  0x2f   :  { %s1049_s0 = scalar_lea.vmem %s70_s21, 16384  ;;  %p1054_p7 = scmp.lt.s32.totalorder %s70_s21, %s70_s21 }
  0x30   :  { %p1050_p6 = scmp.ne.s32.totalorder %s70_s21, %s1049_s0  ;;  %p1055_p8 = scmp.lt.s32.totalorder %s1049_s0, %s1049_s0 }
  0x32   :  { %p1056_p9 = por %p1055_p8, %p1054_p7 }
  0x34   :  { %p1057_p10 = pnand %p1056_p9, %p1050_p6 }
  0x36   :  { %1060 = shalt.err (!%p1057_p10)
}
  0x37   :  { %75 = dma.hbm_to_vmem [thread:$0]  %s1462_s5, 16384, %s70_s21, [#allocation9], %s1094_s1, %s1094_s1, %s1095_s16  }
  0x38   :  { %1081 = dma.done.wait [#allocation3], 1024  }
  0x39   :  { %1082 = vsyncadd [#allocation3], 4294966272 }
  0x3a   :  { %1083 = dma.done.wait [#allocation6], 24576  }
  0x3b   :  { %1084 = vsyncadd [#allocation6], 4294942720 }
  0x3c   :  { %1085 = dma.done.wait [#allocation9], 16416  }
  0x3d   :  { %1086 = vsyncadd [#allocation9], 4294950880  ;;  %v132_v0 = vld [vmem:[#allocation5 + $0xf8] sm:$0xff]  ;;  %v131_v2 = vld [vmem:[#allocation5 + $0xf0] sm:$0xff] }
  0x3e   :  { %v196_v1 = vld [vmem:[#allocation5 + $0x2f8] sm:$0xff]  ;;  %241 = vmatprep.subr.mxu0 %v132_v0  ;;  %v195_v3 = vld [vmem:[#allocation5 + $0x2f0] sm:$0xff]  ;;  %v130_v4 = vld [vmem:[#allocation5 + $0xe8] sm:$0xff] }
  0x3f   :  { %318 = vmatprep.subr.mxu1 %v196_v1  ;;  %v194_v5 = vld [vmem:[#allocation5 + $0x2e8] sm:$0xff]  ;;  %242 = vmatpush1.msra.mxu0 %v131_v2  ;;  %v129_v6 = vld [vmem:[#allocation5 + $0xe0] sm:$0xff]  ;;  %v128_v8 = vld [vmem:[#allocation5 + $0xd8] sm:$0xff] }
  0x40   :  { %319 = vmatpush1.msra.mxu1 %v195_v3  ;;  %v193_v7 = vld [vmem:[#allocation5 + $0x2e0] sm:$0xff]  ;;  %243 = vmatprep.subr.mxu0 %v130_v4  ;;  %v192_v9 = vld [vmem:[#allocation5 + $0x2d8] sm:$0xff]  ;;  %v127_v10 = vld [vmem:[#allocation5 + $0xd0] sm:$0xff] }
  0x41   :  { %320 = vmatprep.subr.mxu1 %v194_v5  ;;  %v191_v11 = vld [vmem:[#allocation5 + $0x2d0] sm:$0xff]  ;;  %244 = vmatpush1.msra.mxu0 %v129_v6  ;;  %v126_v12 = vld [vmem:[#allocation5 + $0xc8] sm:$0xff]  ;;  %v125_v14 = vld [vmem:[#allocation5 + $0xc0] sm:$0xff] }
  0x42   :  { %321 = vmatpush1.msra.mxu1 %v193_v7  ;;  %v190_v13 = vld [vmem:[#allocation5 + $0x2c8] sm:$0xff]  ;;  %245 = vmatprep.subr.mxu0 %v128_v8  ;;  %v189_v15 = vld [vmem:[#allocation5 + $0x2c0] sm:$0xff]  ;;  %v124_v16 = vld [vmem:[#allocation5 + $0xb8] sm:$0xff] }
  0x43   :  { %322 = vmatprep.subr.mxu1 %v192_v9  ;;  %246 = vmatpush1.msra.mxu0 %v127_v10  ;;  %v188_v17 = vld [vmem:[#allocation5 + $0x2b8] sm:$0xff]  ;;  %v123_v18 = vld [vmem:[#allocation5 + $0xb0] sm:$0xff]  ;;  %v122_v20 = vld [vmem:[#allocation5 + $0xa8] sm:$0xff] }
  0x44   :  { %323 = vmatpush1.msra.mxu1 %v191_v11  ;;  %247 = vmatprep.subr.mxu0 %v126_v12  ;;  %v187_v19 = vld [vmem:[#allocation5 + $0x2b0] sm:$0xff]  ;;  %v186_v21 = vld [vmem:[#allocation5 + $0x2a8] sm:$0xff]  ;;  %v121_v22 = vld [vmem:[#allocation5 + $0xa0] sm:$0xff] }
  0x45   :  { %324 = vmatprep.subr.mxu1 %v190_v13  ;;  %248 = vmatpush1.msra.mxu0 %v125_v14  ;;  %v185_v23 = vld [vmem:[#allocation5 + $0x2a0] sm:$0xff]  ;;  %v120_v24 = vld [vmem:[#allocation5 + $0x98] sm:$0xff]  ;;  %v119_v26 = vld [vmem:[#allocation5 + $0x90] sm:$0xff] }
  0x46   :  { %325 = vmatpush1.msra.mxu1 %v189_v15  ;;  %249 = vmatprep.subr.mxu0 %v124_v16  ;;  %v184_v25 = vld [vmem:[#allocation5 + $0x298] sm:$0xff]  ;;  %v183_v27 = vld [vmem:[#allocation5 + $0x290] sm:$0xff]  ;;  %v118_v28 = vld [vmem:[#allocation5 + $0x88] sm:$0xff] }
  0x47   :  { %326 = vmatprep.subr.mxu1 %v188_v17  ;;  %250 = vmatpush1.msra.mxu0 %v123_v18  ;;  %v182_v29 = vld [vmem:[#allocation5 + $0x288] sm:$0xff]  ;;  %v117_v30 = vld [vmem:[#allocation5 + $0x80] sm:$0xff]  ;;  %v116_v32 = vld [vmem:[#allocation5 + $0x78] sm:$0xff] }
  0x48   :  { %327 = vmatpush1.msra.mxu1 %v187_v19  ;;  %251 = vmatprep.subr.mxu0 %v122_v20  ;;  %v181_v31 = vld [vmem:[#allocation5 + $0x280] sm:$0xff]  ;;  %v180_v33 = vld [vmem:[#allocation5 + $0x278] sm:$0xff]  ;;  %v115_v34 = vld [vmem:[#allocation5 + $0x70] sm:$0xff] }
  0x49   :  { %328 = vmatprep.subr.mxu1 %v186_v21  ;;  %252 = vmatpush1.msra.mxu0 %v121_v22  ;;  %v179_v35 = vld [vmem:[#allocation5 + $0x270] sm:$0xff]  ;;  %v114_v36 = vld [vmem:[#allocation5 + $0x68] sm:$0xff]  ;;  %v113_v38 = vld [vmem:[#allocation5 + $0x60] sm:$0xff] }
  0x4a   :  { %329 = vmatpush1.msra.mxu1 %v185_v23  ;;  %253 = vmatprep.subr.mxu0 %v120_v24  ;;  %v178_v37 = vld [vmem:[#allocation5 + $0x268] sm:$0xff]  ;;  %v177_v39 = vld [vmem:[#allocation5 + $0x260] sm:$0xff]  ;;  %v112_v40 = vld [vmem:[#allocation5 + $0x58] sm:$0xff] }
  0x4b   :  { %330 = vmatprep.subr.mxu1 %v184_v25  ;;  %254 = vmatpush1.msra.mxu0 %v119_v26  ;;  %v176_v41 = vld [vmem:[#allocation5 + $0x258] sm:$0xff]  ;;  %v111_v42 = vld [vmem:[#allocation5 + $0x50] sm:$0xff]  ;;  %v110_v44 = vld [vmem:[#allocation5 + $0x48] sm:$0xff] }
  0x4c   :  { %331 = vmatpush1.msra.mxu1 %v183_v27  ;;  %255 = vmatprep.subr.mxu0 %v118_v28  ;;  %v175_v43 = vld [vmem:[#allocation5 + $0x250] sm:$0xff]  ;;  %v174_v45 = vld [vmem:[#allocation5 + $0x248] sm:$0xff]  ;;  %v109_v46 = vld [vmem:[#allocation5 + $0x40] sm:$0xff] }
  0x4d   :  { %332 = vmatprep.subr.mxu1 %v182_v29  ;;  %256 = vmatpush1.msra.mxu0 %v117_v30  ;;  %v173_v47 = vld [vmem:[#allocation5 + $0x240] sm:$0xff]  ;;  %v108_v48 = vld [vmem:[#allocation5 + $0x38] sm:$0xff]  ;;  %v107_v50 = vld [vmem:[#allocation5 + $0x30] sm:$0xff] }
  0x4e   :  { %333 = vmatpush1.msra.mxu1 %v181_v31  ;;  %257 = vmatprep.subr.mxu0 %v116_v32  ;;  %v172_v49 = vld [vmem:[#allocation5 + $0x238] sm:$0xff]  ;;  %v171_v51 = vld [vmem:[#allocation5 + $0x230] sm:$0xff]  ;;  %v106_v52 = vld [vmem:[#allocation5 + $0x28] sm:$0xff] }
  0x4f   :  { %334 = vmatprep.subr.mxu1 %v180_v33  ;;  %258 = vmatpush1.msra.mxu0 %v115_v34  ;;  %v170_v53 = vld [vmem:[#allocation5 + $0x228] sm:$0xff]  ;;  %v105_v54 = vld [vmem:[#allocation5 + $0x20] sm:$0xff]  ;;  %v104_v56 = vld [vmem:[#allocation5 + $0x18] sm:$0xff] }
  0x50   :  { %335 = vmatpush1.msra.mxu1 %v179_v35  ;;  %259 = vmatprep.subr.mxu0 %v114_v36  ;;  %v169_v55 = vld [vmem:[#allocation5 + $0x220] sm:$0xff]  ;;  %v168_v57 = vld [vmem:[#allocation5 + $0x218] sm:$0xff]  ;;  %v103_v58 = vld [vmem:[#allocation5 + $0x10] sm:$0xff] }
  0x51   :  { %336 = vmatprep.subr.mxu1 %v178_v37  ;;  %260 = vmatpush1.msra.mxu0 %v113_v38  ;;  %v167_v59 = vld [vmem:[#allocation5 + $0x210] sm:$0xff]  ;;  %v102_v60 = vld [vmem:[#allocation5 + $0x8] sm:$0xff]  ;;  %v101_v62 = vld [vmem:[#allocation5] sm:$0xff] }
  0x52   :  { %337 = vmatpush1.msra.mxu1 %v177_v39  ;;  %261 = vmatprep.subr.mxu0 %v112_v40  ;;  %v166_v61 = vld [vmem:[#allocation5 + $0x208] sm:$0xff]  ;;  %v165_v63 = vld [vmem:[#allocation5 + $0x200] sm:$0xff]  ;;  %v164_v0 = vld [vmem:[#allocation5 + $0x1f8] sm:$0xff] }
  0x53   :  { %338 = vmatprep.subr.mxu1 %v176_v41  ;;  %262 = vmatpush1.msra.mxu0 %v111_v42  ;;  %v228_v1 = vld [vmem:[#allocation5 + $0x3f8] sm:$0xff]  ;;  %v163_v2 = vld [vmem:[#allocation5 + $0x1f0] sm:$0xff]  ;;  %v162_v4 = vld [vmem:[#allocation5 + $0x1e8] sm:$0xff] }
  0x54   :  { %339 = vmatpush1.msra.mxu1 %v175_v43  ;;  %263 = vmatprep.subr.mxu0 %v110_v44  ;;  %v227_v3 = vld [vmem:[#allocation5 + $0x3f0] sm:$0xff]  ;;  %v226_v5 = vld [vmem:[#allocation5 + $0x3e8] sm:$0xff]  ;;  %v161_v6 = vld [vmem:[#allocation5 + $0x1e0] sm:$0xff] }
  0x55   :  { %340 = vmatprep.subr.mxu1 %v174_v45  ;;  %264 = vmatpush1.msra.mxu0 %v109_v46  ;;  %v225_v7 = vld [vmem:[#allocation5 + $0x3e0] sm:$0xff]  ;;  %v160_v8 = vld [vmem:[#allocation5 + $0x1d8] sm:$0xff]  ;;  %v159_v10 = vld [vmem:[#allocation5 + $0x1d0] sm:$0xff] }
  0x56   :  { %341 = vmatpush1.msra.mxu1 %v173_v47  ;;  %265 = vmatprep.subr.mxu0 %v108_v48  ;;  %v224_v9 = vld [vmem:[#allocation5 + $0x3d8] sm:$0xff]  ;;  %v223_v11 = vld [vmem:[#allocation5 + $0x3d0] sm:$0xff]  ;;  %v158_v12 = vld [vmem:[#allocation5 + $0x1c8] sm:$0xff] }
  0x57   :  { %342 = vmatprep.subr.mxu1 %v172_v49  ;;  %266 = vmatpush1.msra.mxu0 %v107_v50  ;;  %v222_v13 = vld [vmem:[#allocation5 + $0x3c8] sm:$0xff]  ;;  %v157_v14 = vld [vmem:[#allocation5 + $0x1c0] sm:$0xff]  ;;  %v156_v16 = vld [vmem:[#allocation5 + $0x1b8] sm:$0xff] }
  0x58   :  { %343 = vmatpush1.msra.mxu1 %v171_v51  ;;  %267 = vmatprep.subr.mxu0 %v106_v52  ;;  %v221_v15 = vld [vmem:[#allocation5 + $0x3c0] sm:$0xff]  ;;  %v220_v17 = vld [vmem:[#allocation5 + $0x3b8] sm:$0xff]  ;;  %v155_v18 = vld [vmem:[#allocation5 + $0x1b0] sm:$0xff] }
  0x59   :  { %344 = vmatprep.subr.mxu1 %v170_v53  ;;  %268 = vmatpush1.msra.mxu0 %v105_v54  ;;  %v219_v19 = vld [vmem:[#allocation5 + $0x3b0] sm:$0xff]  ;;  %v154_v20 = vld [vmem:[#allocation5 + $0x1a8] sm:$0xff]  ;;  %v153_v22 = vld [vmem:[#allocation5 + $0x1a0] sm:$0xff] }
  0x5a   :  { %345 = vmatpush1.msra.mxu1 %v169_v55  ;;  %269 = vmatprep.subr.mxu0 %v104_v56  ;;  %v218_v21 = vld [vmem:[#allocation5 + $0x3a8] sm:$0xff]  ;;  %v217_v23 = vld [vmem:[#allocation5 + $0x3a0] sm:$0xff]  ;;  %v152_v24 = vld [vmem:[#allocation5 + $0x198] sm:$0xff] }
  0x5b   :  { %346 = vmatprep.subr.mxu1 %v168_v57  ;;  %270 = vmatpush1.msra.mxu0 %v103_v58  ;;  %v216_v25 = vld [vmem:[#allocation5 + $0x398] sm:$0xff]  ;;  %v151_v26 = vld [vmem:[#allocation5 + $0x190] sm:$0xff]  ;;  %v150_v28 = vld [vmem:[#allocation5 + $0x188] sm:$0xff] }
  0x5c   :  { %347 = vmatpush1.msra.mxu1 %v167_v59  ;;  %271 = vmatprep.subr.mxu0 %v102_v60  ;;  %v215_v27 = vld [vmem:[#allocation5 + $0x390] sm:$0xff]  ;;  %v214_v29 = vld [vmem:[#allocation5 + $0x388] sm:$0xff]  ;;  %v149_v30 = vld [vmem:[#allocation5 + $0x180] sm:$0xff] }
  0x5d   :  { %348 = vmatprep.subr.mxu1 %v166_v61  ;;  %272 = vmatpush1.msra.mxu0 %v101_v62  ;;  %v213_v31 = vld [vmem:[#allocation5 + $0x380] sm:$0xff]  ;;  %v148_v32 = vld [vmem:[#allocation5 + $0x178] sm:$0xff]  ;;  %v147_v34 = vld [vmem:[#allocation5 + $0x170] sm:$0xff] }
  0x5e   :  { %349 = vmatpush1.msra.mxu1 %v165_v63  ;;  %273 = vmatprep.subr.mxu0 %v164_v0  ;;  %v212_v33 = vld [vmem:[#allocation5 + $0x378] sm:$0xff]  ;;  %v211_v35 = vld [vmem:[#allocation5 + $0x370] sm:$0xff]  ;;  %v146_v36 = vld [vmem:[#allocation5 + $0x168] sm:$0xff] }
  0x5f   :  { %350 = vmatprep.subr.mxu1 %v228_v1  ;;  %274 = vmatpush2.msra.mxu0 %v163_v2  ;;  %v210_v37 = vld [vmem:[#allocation5 + $0x368] sm:$0xff]  ;;  %v145_v38 = vld [vmem:[#allocation5 + $0x160] sm:$0xff]  ;;  %v144_v40 = vld [vmem:[#allocation5 + $0x158] sm:$0xff] }
  0x60   :  { %351 = vmatpush2.msra.mxu1 %v227_v3  ;;  %275 = vmatprep.subr.mxu0 %v162_v4  ;;  %v209_v39 = vld [vmem:[#allocation5 + $0x360] sm:$0xff]  ;;  %v208_v41 = vld [vmem:[#allocation5 + $0x358] sm:$0xff]  ;;  %v143_v42 = vld [vmem:[#allocation5 + $0x150] sm:$0xff] }
  0x61   :  { %352 = vmatprep.subr.mxu1 %v226_v5  ;;  %276 = vmatpush2.msra.mxu0 %v161_v6  ;;  %v207_v43 = vld [vmem:[#allocation5 + $0x350] sm:$0xff]  ;;  %v142_v44 = vld [vmem:[#allocation5 + $0x148] sm:$0xff]  ;;  %v141_v46 = vld [vmem:[#allocation5 + $0x140] sm:$0xff] }
  0x62   :  { %353 = vmatpush2.msra.mxu1 %v225_v7  ;;  %277 = vmatprep.subr.mxu0 %v160_v8  ;;  %v206_v45 = vld [vmem:[#allocation5 + $0x348] sm:$0xff]  ;;  %v205_v47 = vld [vmem:[#allocation5 + $0x340] sm:$0xff]  ;;  %v140_v48 = vld [vmem:[#allocation5 + $0x138] sm:$0xff] }
  0x63   :  { %354 = vmatprep.subr.mxu1 %v224_v9  ;;  %278 = vmatpush2.msra.mxu0 %v159_v10  ;;  %v204_v49 = vld [vmem:[#allocation5 + $0x338] sm:$0xff]  ;;  %v139_v50 = vld [vmem:[#allocation5 + $0x130] sm:$0xff]  ;;  %v138_v52 = vld [vmem:[#allocation5 + $0x128] sm:$0xff] }
  0x64   :  { %355 = vmatpush2.msra.mxu1 %v223_v11  ;;  %279 = vmatprep.subr.mxu0 %v158_v12  ;;  %v203_v51 = vld [vmem:[#allocation5 + $0x330] sm:$0xff]  ;;  %v202_v53 = vld [vmem:[#allocation5 + $0x328] sm:$0xff]  ;;  %v137_v54 = vld [vmem:[#allocation5 + $0x120] sm:$0xff] }
  0x65   :  { %356 = vmatprep.subr.mxu1 %v222_v13  ;;  %280 = vmatpush2.msra.mxu0 %v157_v14  ;;  %v201_v55 = vld [vmem:[#allocation5 + $0x320] sm:$0xff]  ;;  %v136_v56 = vld [vmem:[#allocation5 + $0x118] sm:$0xff]  ;;  %v135_v58 = vld [vmem:[#allocation5 + $0x110] sm:$0xff] }
  0x66   :  { %357 = vmatpush2.msra.mxu1 %v221_v15  ;;  %281 = vmatprep.subr.mxu0 %v156_v16  ;;  %v200_v57 = vld [vmem:[#allocation5 + $0x318] sm:$0xff]  ;;  %v199_v59 = vld [vmem:[#allocation5 + $0x310] sm:$0xff]  ;;  %v134_v60 = vld [vmem:[#allocation5 + $0x108] sm:$0xff] }
  0x67   :  { %358 = vmatprep.subr.mxu1 %v220_v17  ;;  %282 = vmatpush2.msra.mxu0 %v155_v18  ;;  %v198_v61 = vld [vmem:[#allocation5 + $0x308] sm:$0xff]  ;;  %v133_v62 = vld [vmem:[#allocation5 + $0x100] sm:$0xff]  ;;  %v96_v1 = vld [vmem:[#allocation2 + $0x18] sm:$0xff] }
  0x68   :  { %359 = vmatpush2.msra.mxu1 %v219_v19  ;;  %283 = vmatprep.subr.mxu0 %v154_v20  ;;  %v94_v63 = vld [vmem:[#allocation2 + $0x8] sm:$0xff]  ;;  %v197_v0 = vld [vmem:[#allocation5 + $0x300] sm:$0xff]  ;;  %v95_v3 = vld [vmem:[#allocation2 + $0x10] sm:$0xff] }
  0x69   :  { %360 = vmatprep.subr.mxu1 %v218_v21  ;;  %284 = vmatpush2.msra.mxu0 %v153_v22  ;;  %v93_v2 = vld [vmem:[#allocation2] sm:$0xff]  ;;  %v98_v4 = vld [vmem:[#allocation2 + $0x28] sm:$0xff]  ;;  %v100_v5 = vld [vmem:[#allocation2 + $0x38] sm:$0xff] }
  0x6a   :  { %361 = vmatpush2.msra.mxu1 %v217_v23  ;;  %285 = vmatprep.subr.mxu0 %v152_v24  ;;  %v430_v6 = vld [vmem:[#allocation7 + $0xf8] sm:$0xff]  ;;  %v429_v7 = vld [vmem:[#allocation7 + $0xf0] sm:$0xff]  ;;  %v97_v8 = vld [vmem:[#allocation2 + $0x20] sm:$0xff] }
  0x6b   :  { %362 = vmatprep.subr.mxu1 %v216_v25  ;;  %286 = vmatpush2.msra.mxu0 %v151_v26  ;;  %v99_v9 = vld [vmem:[#allocation2 + $0x30] sm:$0xff]  ;;  %v428_v10 = vld [vmem:[#allocation7 + $0xe8] sm:$0xff]  ;;  %v427_v11 = vld [vmem:[#allocation7 + $0xe0] sm:$0xff] }
  0x6c   :  { %363 = vmatpush2.msra.mxu1 %v215_v27  ;;  %287 = vmatprep.subr.mxu0 %v150_v28  ;;  %v426_v12 = vld [vmem:[#allocation7 + $0xd8] sm:$0xff]  ;;  %v425_v13 = vld [vmem:[#allocation7 + $0xd0] sm:$0xff]  ;;  %v424_v14 = vld [vmem:[#allocation7 + $0xc8] sm:$0xff] }
  0x6d   :  { %364 = vmatprep.subr.mxu1 %v214_v29  ;;  %288 = vmatpush2.msra.mxu0 %v149_v30  ;;  %v423_v15 = vld [vmem:[#allocation7 + $0xc0] sm:$0xff]  ;;  %v422_v16 = vld [vmem:[#allocation7 + $0xb8] sm:$0xff]  ;;  %v421_v17 = vld [vmem:[#allocation7 + $0xb0] sm:$0xff] }
  0x6e   :  { %365 = vmatpush2.msra.mxu1 %v213_v31  ;;  %289 = vmatprep.subr.mxu0 %v148_v32  ;;  %v420_v18 = vld [vmem:[#allocation7 + $0xa8] sm:$0xff]  ;;  %v419_v19 = vld [vmem:[#allocation7 + $0xa0] sm:$0xff]  ;;  %v418_v20 = vld [vmem:[#allocation7 + $0x98] sm:$0xff] }
  0x6f   :  { %366 = vmatprep.subr.mxu1 %v212_v33  ;;  %290 = vmatpush2.msra.mxu0 %v147_v34  ;;  %v417_v21 = vld [vmem:[#allocation7 + $0x90] sm:$0xff]  ;;  %v416_v22 = vld [vmem:[#allocation7 + $0x88] sm:$0xff]  ;;  %v415_v23 = vld [vmem:[#allocation7 + $0x80] sm:$0xff] }
  0x70   :  { %367 = vmatpush2.msra.mxu1 %v211_v35  ;;  %291 = vmatprep.subr.mxu0 %v146_v36  ;;  %v414_v24 = vld [vmem:[#allocation7 + $0x78] sm:$0xff]  ;;  %v413_v25 = vld [vmem:[#allocation7 + $0x70] sm:$0xff]  ;;  %v412_v26 = vld [vmem:[#allocation7 + $0x68] sm:$0xff] }
  0x71   :  { %368 = vmatprep.subr.mxu1 %v210_v37  ;;  %292 = vmatpush2.msra.mxu0 %v145_v38  ;;  %v411_v27 = vld [vmem:[#allocation7 + $0x60] sm:$0xff]  ;;  %v410_v28 = vld [vmem:[#allocation7 + $0x58] sm:$0xff]  ;;  %v409_v29 = vld [vmem:[#allocation7 + $0x50] sm:$0xff] }
  0x72   :  { %369 = vmatpush2.msra.mxu1 %v209_v39  ;;  %293 = vmatprep.subr.mxu0 %v144_v40  ;;  %v408_v30 = vld [vmem:[#allocation7 + $0x48] sm:$0xff]  ;;  %v407_v31 = vld [vmem:[#allocation7 + $0x40] sm:$0xff]  ;;  %v406_v32 = vld [vmem:[#allocation7 + $0x38] sm:$0xff] }
  0x73   :  { %370 = vmatprep.subr.mxu1 %v208_v41  ;;  %294 = vmatpush2.msra.mxu0 %v143_v42  ;;  %v405_v33 = vld [vmem:[#allocation7 + $0x30] sm:$0xff]  ;;  %v404_v34 = vld [vmem:[#allocation7 + $0x28] sm:$0xff]  ;;  %v403_v35 = vld [vmem:[#allocation7 + $0x20] sm:$0xff] }
  0x74   :  { %371 = vmatpush2.msra.mxu1 %v207_v43  ;;  %295 = vmatprep.subr.mxu0 %v142_v44  ;;  %v402_v36 = vld [vmem:[#allocation7 + $0x18] sm:$0xff]  ;;  %v401_v37 = vld [vmem:[#allocation7 + $0x10] sm:$0xff]  ;;  %v400_v38 = vld [vmem:[#allocation7 + $0x8] sm:$0xff] }
  0x75   :  { %372 = vmatprep.subr.mxu1 %v206_v45  ;;  %296 = vmatpush2.msra.mxu0 %v141_v46  ;;  %v399_v39 = vld [vmem:[#allocation7] sm:$0xff]  ;;  %v462_v40 = vld [vmem:[#allocation7 + $0x1f8] sm:$0xff]  ;;  %v461_v41 = vld [vmem:[#allocation7 + $0x1f0] sm:$0xff] }
  0x76   :  { %373 = vmatpush2.msra.mxu1 %v205_v47  ;;  %297 = vmatprep.subr.mxu0 %v140_v48  ;;  %v460_v42 = vld [vmem:[#allocation7 + $0x1e8] sm:$0xff]  ;;  %v459_v43 = vld [vmem:[#allocation7 + $0x1e0] sm:$0xff]  ;;  %v458_v44 = vld [vmem:[#allocation7 + $0x1d8] sm:$0xff] }
  0x77   :  { %374 = vmatprep.subr.mxu1 %v204_v49  ;;  %298 = vmatpush2.msra.mxu0 %v139_v50  ;;  %v457_v45 = vld [vmem:[#allocation7 + $0x1d0] sm:$0xff]  ;;  %v456_v46 = vld [vmem:[#allocation7 + $0x1c8] sm:$0xff]  ;;  %v455_v47 = vld [vmem:[#allocation7 + $0x1c0] sm:$0xff] }
  0x78   :  { %375 = vmatpush2.msra.mxu1 %v203_v51  ;;  %299 = vmatprep.subr.mxu0 %v138_v52  ;;  %v454_v48 = vld [vmem:[#allocation7 + $0x1b8] sm:$0xff]  ;;  %v453_v49 = vld [vmem:[#allocation7 + $0x1b0] sm:$0xff]  ;;  %v452_v50 = vld [vmem:[#allocation7 + $0x1a8] sm:$0xff] }
  0x79   :  { %376 = vmatprep.subr.mxu1 %v202_v53  ;;  %300 = vmatpush2.msra.mxu0 %v137_v54  ;;  %v451_v51 = vld [vmem:[#allocation7 + $0x1a0] sm:$0xff]  ;;  %v450_v52 = vld [vmem:[#allocation7 + $0x198] sm:$0xff]  ;;  %v449_v53 = vld [vmem:[#allocation7 + $0x190] sm:$0xff] }
  0x7a   :  { %377 = vmatpush2.msra.mxu1 %v201_v55  ;;  %301 = vmatprep.subr.mxu0 %v136_v56  ;;  %v448_v54 = vld [vmem:[#allocation7 + $0x188] sm:$0xff]  ;;  %v447_v55 = vld [vmem:[#allocation7 + $0x180] sm:$0xff]  ;;  %v446_v56 = vld [vmem:[#allocation7 + $0x178] sm:$0xff] }
  0x7b   :  { %378 = vmatprep.subr.mxu1 %v200_v57  ;;  %302 = vmatpush2.msra.mxu0 %v135_v58  ;;  %v445_v57 = vld [vmem:[#allocation7 + $0x170] sm:$0xff]  ;;  %v444_v58 = vld [vmem:[#allocation7 + $0x168] sm:$0xff] }
  0x7c   :  { %379 = vmatpush2.msra.mxu1 %v199_v59  ;;  %303 = vmatprep.subr.mxu0 %v134_v60  ;;  %v443_v59 = vld [vmem:[#allocation7 + $0x160] sm:$0xff]  ;;  %v442_v60 = vld [vmem:[#allocation7 + $0x158] sm:$0xff] }
  0x7d   :  { %380 = vmatprep.subr.mxu1 %v198_v61  ;;  %304 = vmatpush2.msra.mxu0 %v133_v62  ;;  %v441_v61 = vld [vmem:[#allocation7 + $0x150] sm:$0xff]  ;;  %v440_v62 = vld [vmem:[#allocation7 + $0x148] sm:$0xff] }
  0x7e   :  { %305 = vmatprep.mubr.f32.mxu0 %v94_v63  ;;  %381 = vmatpush2.msra.mxu1 %v197_v0  ;;  %v439_v63 = vld [vmem:[#allocation7 + $0x140] sm:$0xff]  ;;  %v438_v0 = vld [vmem:[#allocation7 + $0x138] sm:$0xff] }
  0x7f   :  { %382 = vmatprep.mubr.f32.mxu1 %v96_v1  ;;  %306 = vmatmul.mubr.f32.vlgmr.msra.gmra.mxu0 %v93_v2  ;;  %v437_v1 = vld [vmem:[#allocation7 + $0x130] sm:$0xff]  ;;  %v436_v2 = vld [vmem:[#allocation7 + $0x128] sm:$0xff] }
  0x80   :  { %383 = vmatmul.mubr.f32.vlgmr.msra.gmra.mxu1 %v95_v3  ;;  %311 = vmatprep.mubr.f32.mxu0 %v98_v4  ;;  %v435_v3 = vld [vmem:[#allocation7 + $0x120] sm:$0xff]  ;;  %v434_v4 = vld [vmem:[#allocation7 + $0x118] sm:$0xff] }
  0x81   :  { %388 = vmatprep.mubr.f32.mxu1 %v100_v5  ;;  %475 = vmatprep.subr.mxu0 %v430_v6  ;;  %v433_v5 = vld [vmem:[#allocation7 + $0x110] sm:$0xff]  ;;  %v432_v6 = vld [vmem:[#allocation7 + $0x108] sm:$0xff] }
  0x82   :  { %476 = vmatpush1.msra.mxu0 %v429_v7  ;;  %v431_v7 = vld [vmem:[#allocation7 + $0x100] sm:$0xff] }
  0x83   :  { %312 = vmatmul.mubr.f32.gmra.mxu0 %v97_v8  ;;  %477 = vmatprep.subr.mxu0 %v428_v10  ;;  %v617_v8 = vld [vmem:[#allocation10 + $0x1e8] sm:$0xff]  ;;  %v1166_v10 = vld [vmem:[#allocation10 + $0x1f8] sm:$0xff] }
  0x84   :  { %389 = vmatmul.mubr.f32.gmra.mxu1 %v99_v9  ;;  %478 = vmatpush1.msra.mxu0 %v427_v11  ;;  %v616_v9 = vld [vmem:[#allocation10 + $0x1e0] sm:$0xff]  ;;  %v613_v11 = vld [vmem:[#allocation10 + $0x1c8] sm:$0xff] }
  0x85   :  { %479 = vmatprep.subr.mxu0 %v426_v12  ;;  %706 = vmatprep.subr.mxu1 %v617_v8  ;;  %v612_v12 = vld [vmem:[#allocation10 + $0x1c0] sm:$0xff] }
  0x86   :  { %480 = vmatpush1.msra.mxu0 %v425_v13  ;;  %707 = vmatpush1.msra.mxu1 %v616_v9  ;;  %v609_v13 = vld [vmem:[#allocation10 + $0x1a8] sm:$0xff] }
  0x87   :  { %481 = vmatprep.subr.mxu0 %v424_v14  ;;  %708 = vmatprep.subr.mxu1 %v613_v11  ;;  %v608_v14 = vld [vmem:[#allocation10 + $0x1a0] sm:$0xff] }
  0x88   :  { %482 = vmatpush1.msra.mxu0 %v423_v15  ;;  %709 = vmatpush1.msra.mxu1 %v612_v12  ;;  %v605_v15 = vld [vmem:[#allocation10 + $0x188] sm:$0xff] }
  0x89   :  { %483 = vmatprep.subr.mxu0 %v422_v16  ;;  %710 = vmatprep.subr.mxu1 %v609_v13  ;;  %v604_v16 = vld [vmem:[#allocation10 + $0x180] sm:$0xff] }
  0x8a   :  { %484 = vmatpush1.msra.mxu0 %v421_v17  ;;  %711 = vmatpush1.msra.mxu1 %v608_v14  ;;  %v601_v17 = vld [vmem:[#allocation10 + $0x168] sm:$0xff] }
  0x8b   :  { %485 = vmatprep.subr.mxu0 %v420_v18  ;;  %712 = vmatprep.subr.mxu1 %v605_v15  ;;  %v600_v18 = vld [vmem:[#allocation10 + $0x160] sm:$0xff] }
  0x8c   :  { %486 = vmatpush1.msra.mxu0 %v419_v19  ;;  %713 = vmatpush1.msra.mxu1 %v604_v16  ;;  %v597_v19 = vld [vmem:[#allocation10 + $0x148] sm:$0xff] }
  0x8d   :  { %487 = vmatprep.subr.mxu0 %v418_v20  ;;  %714 = vmatprep.subr.mxu1 %v601_v17  ;;  %v596_v20 = vld [vmem:[#allocation10 + $0x140] sm:$0xff] }
  0x8e   :  { %488 = vmatpush1.msra.mxu0 %v417_v21  ;;  %715 = vmatpush1.msra.mxu1 %v600_v18  ;;  %v593_v21 = vld [vmem:[#allocation10 + $0x128] sm:$0xff] }
  0x8f   :  { %489 = vmatprep.subr.mxu0 %v416_v22  ;;  %716 = vmatprep.subr.mxu1 %v597_v19  ;;  %v592_v22 = vld [vmem:[#allocation10 + $0x120] sm:$0xff] }
  0x90   :  { %490 = vmatpush1.msra.mxu0 %v415_v23  ;;  %717 = vmatpush1.msra.mxu1 %v596_v20  ;;  %v589_v23 = vld [vmem:[#allocation10 + $0x108] sm:$0xff] }
  0x91   :  { %491 = vmatprep.subr.mxu0 %v414_v24  ;;  %718 = vmatprep.subr.mxu1 %v593_v21  ;;  %v588_v24 = vld [vmem:[#allocation10 + $0x100] sm:$0xff] }
  0x92   :  { %492 = vmatpush1.msra.mxu0 %v413_v25  ;;  %719 = vmatpush1.msra.mxu1 %v592_v22  ;;  %v585_v25 = vld [vmem:[#allocation10 + $0xe8] sm:$0xff] }
  0x93   :  { %493 = vmatprep.subr.mxu0 %v412_v26  ;;  %720 = vmatprep.subr.mxu1 %v589_v23  ;;  %v584_v26 = vld [vmem:[#allocation10 + $0xe0] sm:$0xff] }
  0x94   :  { %494 = vmatpush1.msra.mxu0 %v411_v27  ;;  %721 = vmatpush1.msra.mxu1 %v588_v24  ;;  %v581_v27 = vld [vmem:[#allocation10 + $0xc8] sm:$0xff] }
  0x95   :  { %495 = vmatprep.subr.mxu0 %v410_v28  ;;  %722 = vmatprep.subr.mxu1 %v585_v25  ;;  %v580_v28 = vld [vmem:[#allocation10 + $0xc0] sm:$0xff] }
  0x96   :  { %496 = vmatpush1.msra.mxu0 %v409_v29  ;;  %723 = vmatpush1.msra.mxu1 %v584_v26  ;;  %v577_v29 = vld [vmem:[#allocation10 + $0xa8] sm:$0xff] }
  0x97   :  { %497 = vmatprep.subr.mxu0 %v408_v30  ;;  %724 = vmatprep.subr.mxu1 %v581_v27  ;;  %v576_v30 = vld [vmem:[#allocation10 + $0xa0] sm:$0xff]  ;;  %v1182_v27 = vld [vmem:[#allocation10 + $0x1f0] sm:$0xff] }
  0x98   :  { %498 = vmatpush1.msra.mxu0 %v407_v31  ;;  %725 = vmatpush1.msra.mxu1 %v580_v28  ;;  %v573_v31 = vld [vmem:[#allocation10 + $0x88] sm:$0xff] }
  0x99   :  { %499 = vmatprep.subr.mxu0 %v406_v32  ;;  %726 = vmatprep.subr.mxu1 %v577_v29  ;;  %v572_v32 = vld [vmem:[#allocation10 + $0x80] sm:$0xff]  ;;  %v1184_v29 = vld [vmem:[#allocation10 + $0x1d8] sm:$0xff] }
  0x9a   :  { %500 = vmatpush1.msra.mxu0 %v405_v33  ;;  %727 = vmatpush1.msra.mxu1 %v576_v30  ;;  %v569_v33 = vld [vmem:[#allocation10 + $0x68] sm:$0xff] }
  0x9b   :  { %501 = vmatprep.subr.mxu0 %v404_v34  ;;  %728 = vmatprep.subr.mxu1 %v573_v31  ;;  %v568_v34 = vld [vmem:[#allocation10 + $0x60] sm:$0xff]  ;;  %v1186_v31 = vld [vmem:[#allocation10 + $0x1d0] sm:$0xff] }
  0x9c   :  { %502 = vmatpush1.msra.mxu0 %v403_v35  ;;  %729 = vmatpush1.msra.mxu1 %v572_v32  ;;  %v565_v35 = vld [vmem:[#allocation10 + $0x48] sm:$0xff] }
  0x9d   :  { %503 = vmatprep.subr.mxu0 %v402_v36  ;;  %730 = vmatprep.subr.mxu1 %v569_v33  ;;  %v564_v36 = vld [vmem:[#allocation10 + $0x40] sm:$0xff]  ;;  %v1189_v33 = vld [vmem:[#allocation10 + $0x1b8] sm:$0xff] }
  0x9e   :  { %504 = vmatpush1.msra.mxu0 %v401_v37  ;;  %731 = vmatpush1.msra.mxu1 %v568_v34  ;;  %v561_v37 = vld [vmem:[#allocation10 + $0x28] sm:$0xff]  ;;  %v1192_v34 = vld [vmem:[#allocation10 + $0x1b0] sm:$0xff] }
  0x9f   :  { %505 = vmatprep.subr.mxu0 %v400_v38  ;;  %732 = vmatprep.subr.mxu1 %v565_v35  ;;  %v560_v38 = vld [vmem:[#allocation10 + $0x20] sm:$0xff]  ;;  %v1195_v35 = vld [vmem:[#allocation10 + $0x198] sm:$0xff] }
  0xa0   :  { %506 = vmatpush1.msra.mxu0 %v399_v39  ;;  %733 = vmatpush1.msra.mxu1 %v564_v36  ;;  %v557_v39 = vld [vmem:[#allocation10 + $0x8] sm:$0xff]  ;;  %v1198_v36 = vld [vmem:[#allocation10 + $0x190] sm:$0xff] }
  0xa1   :  { %507 = vmatprep.subr.mxu0 %v462_v40  ;;  %734 = vmatprep.subr.mxu1 %v561_v37  ;;  %v556_v40 = vld [vmem:[#allocation10] sm:$0xff]  ;;  %v1201_v37 = vld [vmem:[#allocation10 + $0x178] sm:$0xff] }
  0xa2   :  { %508 = vmatpush2.msra.mxu0 %v461_v41  ;;  %735 = vmatpush1.msra.mxu1 %v560_v38  ;;  %v681_v41 = vld [vmem:[#allocation10 + $0x3e8] sm:$0xff]  ;;  %v1204_v38 = vld [vmem:[#allocation10 + $0x170] sm:$0xff] }
  0xa3   :  { %509 = vmatprep.subr.mxu0 %v460_v42  ;;  %736 = vmatprep.subr.mxu1 %v557_v39  ;;  %v680_v42 = vld [vmem:[#allocation10 + $0x3e0] sm:$0xff]  ;;  %v1207_v39 = vld [vmem:[#allocation10 + $0x158] sm:$0xff] }
  0xa4   :  { %510 = vmatpush2.msra.mxu0 %v459_v43  ;;  %737 = vmatpush1.msra.mxu1 %v556_v40  ;;  %v677_v43 = vld [vmem:[#allocation10 + $0x3c8] sm:$0xff]  ;;  %v1210_v40 = vld [vmem:[#allocation10 + $0x150] sm:$0xff] }
  0xa5   :  { %511 = vmatprep.subr.mxu0 %v458_v44  ;;  %738 = vmatprep.subr.mxu1 %v681_v41  ;;  %v676_v44 = vld [vmem:[#allocation10 + $0x3c0] sm:$0xff]  ;;  %v1213_v41 = vld [vmem:[#allocation10 + $0x138] sm:$0xff] }
  0xa6   :  { %512 = vmatpush2.msra.mxu0 %v457_v45  ;;  %739 = vmatpush2.msra.mxu1 %v680_v42  ;;  %v673_v45 = vld [vmem:[#allocation10 + $0x3a8] sm:$0xff]  ;;  %v1216_v42 = vld [vmem:[#allocation10 + $0x130] sm:$0xff] }
  0xa7   :  { %513 = vmatprep.subr.mxu0 %v456_v46  ;;  %740 = vmatprep.subr.mxu1 %v677_v43  ;;  %v672_v46 = vld [vmem:[#allocation10 + $0x3a0] sm:$0xff]  ;;  %v1219_v43 = vld [vmem:[#allocation10 + $0x118] sm:$0xff] }
  0xa8   :  { %514 = vmatpush2.msra.mxu0 %v455_v47  ;;  %741 = vmatpush2.msra.mxu1 %v676_v44  ;;  %v669_v47 = vld [vmem:[#allocation10 + $0x388] sm:$0xff]  ;;  %v1222_v44 = vld [vmem:[#allocation10 + $0x110] sm:$0xff] }
  0xa9   :  { %515 = vmatprep.subr.mxu0 %v454_v48  ;;  %742 = vmatprep.subr.mxu1 %v673_v45  ;;  %v668_v48 = vld [vmem:[#allocation10 + $0x380] sm:$0xff]  ;;  %v1225_v45 = vld [vmem:[#allocation10 + $0xf8] sm:$0xff] }
  0xaa   :  { %516 = vmatpush2.msra.mxu0 %v453_v49  ;;  %743 = vmatpush2.msra.mxu1 %v672_v46  ;;  %v665_v49 = vld [vmem:[#allocation10 + $0x368] sm:$0xff]  ;;  %v1228_v46 = vld [vmem:[#allocation10 + $0xf0] sm:$0xff] }
  0xab   :  { %517 = vmatprep.subr.mxu0 %v452_v50  ;;  %744 = vmatprep.subr.mxu1 %v669_v47  ;;  %v664_v50 = vld [vmem:[#allocation10 + $0x360] sm:$0xff]  ;;  %v1231_v47 = vld [vmem:[#allocation10 + $0xd8] sm:$0xff] }
  0xac   :  { %518 = vmatpush2.msra.mxu0 %v451_v51  ;;  %745 = vmatpush2.msra.mxu1 %v668_v48  ;;  %v661_v51 = vld [vmem:[#allocation10 + $0x348] sm:$0xff]  ;;  %v1234_v48 = vld [vmem:[#allocation10 + $0xd0] sm:$0xff] }
  0xad   :  { %519 = vmatprep.subr.mxu0 %v450_v52  ;;  %746 = vmatprep.subr.mxu1 %v665_v49  ;;  %v660_v52 = vld [vmem:[#allocation10 + $0x340] sm:$0xff]  ;;  %v1237_v49 = vld [vmem:[#allocation10 + $0xb8] sm:$0xff] }
  0xae   :  { %520 = vmatpush2.msra.mxu0 %v449_v53  ;;  %747 = vmatpush2.msra.mxu1 %v664_v50  ;;  %v657_v53 = vld [vmem:[#allocation10 + $0x328] sm:$0xff]  ;;  %v1240_v50 = vld [vmem:[#allocation10 + $0xb0] sm:$0xff] }
  0xaf   :  { %521 = vmatprep.subr.mxu0 %v448_v54  ;;  %748 = vmatprep.subr.mxu1 %v661_v51  ;;  %v656_v54 = vld [vmem:[#allocation10 + $0x320] sm:$0xff]  ;;  %v1243_v51 = vld [vmem:[#allocation10 + $0x98] sm:$0xff] }
  0xb0   :  { %522 = vmatpush2.msra.mxu0 %v447_v55  ;;  %749 = vmatpush2.msra.mxu1 %v660_v52  ;;  %v653_v55 = vld [vmem:[#allocation10 + $0x308] sm:$0xff]  ;;  %v1246_v52 = vld [vmem:[#allocation10 + $0x90] sm:$0xff] }
  0xb1   :  { %523 = vmatprep.subr.mxu0 %v446_v56  ;;  %750 = vmatprep.subr.mxu1 %v657_v53  ;;  %v652_v56 = vld [vmem:[#allocation10 + $0x300] sm:$0xff]  ;;  %v1249_v53 = vld [vmem:[#allocation10 + $0x78] sm:$0xff] }
  0xb2   :  { %524 = vmatpush2.msra.mxu0 %v445_v57  ;;  %751 = vmatpush2.msra.mxu1 %v656_v54  ;;  %v649_v57 = vld [vmem:[#allocation10 + $0x2e8] sm:$0xff]  ;;  %v1252_v54 = vld [vmem:[#allocation10 + $0x70] sm:$0xff] }
  0xb3   :  { %525 = vmatprep.subr.mxu0 %v444_v58  ;;  %752 = vmatprep.subr.mxu1 %v653_v55  ;;  %v648_v58 = vld [vmem:[#allocation10 + $0x2e0] sm:$0xff]  ;;  %v1255_v55 = vld [vmem:[#allocation10 + $0x58] sm:$0xff] }
  0xb4   :  { %526 = vmatpush2.msra.mxu0 %v443_v59  ;;  %753 = vmatpush2.msra.mxu1 %v652_v56  ;;  %v645_v59 = vld [vmem:[#allocation10 + $0x2c8] sm:$0xff]  ;;  %v1258_v56 = vld [vmem:[#allocation10 + $0x50] sm:$0xff] }
  0xb5   :  { %527 = vmatprep.subr.mxu0 %v442_v60  ;;  %754 = vmatprep.subr.mxu1 %v649_v57  ;;  %v644_v60 = vld [vmem:[#allocation10 + $0x2c0] sm:$0xff]  ;;  %v1261_v57 = vld [vmem:[#allocation10 + $0x38] sm:$0xff] }
  0xb6   :  { %528 = vmatpush2.msra.mxu0 %v441_v61  ;;  %755 = vmatpush2.msra.mxu1 %v648_v58  ;;  %v641_v61 = vld [vmem:[#allocation10 + $0x2a8] sm:$0xff]  ;;  %v1264_v58 = vld [vmem:[#allocation10 + $0x30] sm:$0xff] }
  0xb7   :  { %529 = vmatprep.subr.mxu0 %v440_v62  ;;  %756 = vmatprep.subr.mxu1 %v645_v59  ;;  %v640_v62 = vld [vmem:[#allocation10 + $0x2a0] sm:$0xff]  ;;  %v1267_v59 = vld [vmem:[#allocation10 + $0x18] sm:$0xff] }
  0xb8   :  { %530 = vmatpush2.msra.mxu0 %v439_v63  ;;  %757 = vmatpush2.msra.mxu1 %v644_v60  ;;  %v637_v63 = vld [vmem:[#allocation10 + $0x288] sm:$0xff]  ;;  %v1270_v60 = vld [vmem:[#allocation10 + $0x10] sm:$0xff] }
  0xb9   :  { %531 = vmatprep.subr.mxu0 %v438_v0  ;;  %758 = vmatprep.subr.mxu1 %v641_v61  ;;  %v636_v0 = vld [vmem:[#allocation10 + $0x280] sm:$0xff]  ;;  %v1273_v61 = vld [vmem:[#allocation10 + $0x3f8] sm:$0xff] }
  0xba   :  { %532 = vmatpush2.msra.mxu0 %v437_v1  ;;  %759 = vmatpush2.msra.mxu1 %v640_v62  ;;  %v633_v1 = vld [vmem:[#allocation10 + $0x268] sm:$0xff]  ;;  %v1276_v62 = vld [vmem:[#allocation10 + $0x3f0] sm:$0xff] }
  0xbb   :  { %533 = vmatprep.subr.mxu0 %v436_v2  ;;  %760 = vmatprep.subr.mxu1 %v637_v63  ;;  %v231_v2 = vlaneseq  ;;  %v1279_v63 = vld [vmem:[#allocation10 + $0x3d8] sm:$0xff] }
  0xbc   :  { %534 = vmatpush2.msra.mxu0 %v435_v3  ;;  %761 = vmatpush2.msra.mxu1 %v636_v0  ;;  %v1282_v0 = vld [vmem:[#allocation10 + $0x3d0] sm:$0xff] }
  0xbd   :  { %535 = vmatprep.subr.mxu0 %v434_v4  ;;  %762 = vmatprep.subr.mxu1 %v633_v1  ;;  %v1169_v3 = vshrl.u32 %v231_v2, 7  ;;  %v1285_v1 = vld [vmem:[#allocation10 + $0x3b8] sm:$0xff]  ;;  %v1288_v2 = vld [vmem:[#allocation10 + $0x3b0] sm:$0xff] }
  0xbe   :  { %536 = vmatpush2.msra.mxu0 %v433_v5  ;;  %v229_v5 = vld [vmem:[%s1459_s2] sm:$0x3] }
  0xbf   :  { %537 = vmatprep.subr.mxu0 %v432_v6  ;;  %1482 = vst [vmem:[#allocation16_spill] sm:$0xff] %v1169_v3  ;;  %v1172_v4 = vsub.s32 0, %v1169_v3  ;;  %v1178_v6 = vsub.s32 1, %v1169_v3  ;;  %v1353_v3 = vld [vmem:[#allocation10 + $0x258] sm:$0xff] }
  0xc0   :  { %538 = vmatpush2.msra.mxu0 %v431_v7  ;;  %1492 = vst [vmem:[#allocation26_spill] sm:$0xff] %v1353_v3 }
  0xc1   :  { %783 = vmatprep.subr.mxu0 %v1166_v10  ;;  %v234_v7 = vrot.slane %v229_v5, %v1172_v4  ;;  %v238_v8 = vrot.slane %v229_v5, %v1178_v6  ;;  %v1291_v5 = vld [vmem:[#allocation10 + $0x398] sm:$0xff] }
 0x13f   :  { %v307_v9 = vpop.f32.mrf.mxu0 }
 0x140   :  { %v384_v11 = vpop.f32.mrf.mxu1  ;;  %v308_v12 = vadd.f32 %v307_v9, %v234_v7  ;;  %v1300_v9 = vld [vmem:[#allocation10 + $0x370] sm:$0xff] }
 0x141   :  { %v309_v13 = vpop.f32.mrf.mxu0 }
 0x142   :  { %v386_v14 = vpop.f32.mrf.mxu1  ;;  %v310_v15 = vadd.f32 %v309_v13, %v238_v8  ;;  %v385_v16 = vadd.f32 %v384_v11, %v308_v12  ;;  %v1303_v11 = vld [vmem:[#allocation10 + $0x358] sm:$0xff]  ;;  %v1306_v12 = vld [vmem:[#allocation10 + $0x350] sm:$0xff] }
 0x143   :  { %v313_v17 = vpop.f32.mrf.mxu0  ;;  %v1309_v13 = vld [vmem:[#allocation10 + $0x338] sm:$0xff] }
 0x144   :  { %v390_v18 = vpop.f32.mrf.mxu1  ;;  %v387_v19 = vadd.f32 %v386_v14, %v310_v15  ;;  %v314_v20 = vadd.f32 %v313_v17, %v234_v7  ;;  %v395_v26 = vmax.f32 %v385_v16, 0.0  ;;  %v1294_v7 = vld [vmem:[#allocation10 + $0x390] sm:$0xff]  ;;  %v1315_v15 = vld [vmem:[#allocation10 + $0x318] sm:$0xff] }
 0x145   :  { %v315_v21 = vpop.f32.mrf.mxu0  ;;  %v1312_v14 = vld [vmem:[#allocation10 + $0x330] sm:$0xff]  ;;  %v1321_v17 = vld [vmem:[#allocation10 + $0x2f8] sm:$0xff] }
 0x146   :  { %v392_v22 = vpop.f32.mrf.mxu1  ;;  %v396_v23 = vmax.f32 %v387_v19, 0.0  ;;  %v316_v24 = vadd.f32 %v315_v21, %v238_v8  ;;  %v391_v25 = vadd.f32 %v390_v18, %v314_v20  ;;  %v1297_v8 = vld [vmem:[#allocation10 + $0x378] sm:$0xff]  ;;  %v1318_v16 = vld [vmem:[#allocation10 + $0x310] sm:$0xff] }
 0x147   :  { %v1324_v18 = vld [vmem:[#allocation10 + $0x2f0] sm:$0xff]  ;;  %v1327_v19 = vld [vmem:[#allocation10 + $0x2d8] sm:$0xff] }
 0x148   :  { %539 = vmatprep.mubr.f32.mxu0 %v396_v23  ;;  %v393_v28 = vadd.f32 %v392_v22, %v316_v24  ;;  %v397_v30 = vmax.f32 %v391_v25, 0.0  ;;  %1483 = vst [vmem:[#allocation17_spill] sm:$0xff] %v1324_v18  ;;  %1484 = vst [vmem:[#allocation18_spill] sm:$0xff] %v1327_v19  ;;  %v1330_v20 = vld [vmem:[#allocation10 + $0x2d0] sm:$0xff]  ;;  %v1333_v21 = vld [vmem:[#allocation10 + $0x2b8] sm:$0xff] }
 0x149   :  { %540 = vmatmul.mubr.f32.vlgmr.msra.gmra.mxu0 %v395_v26  ;;  %1485 = vst [vmem:[#allocation19_spill] sm:$0xff] %v1330_v20  ;;  %1486 = vst [vmem:[#allocation20_spill] sm:$0xff] %v1333_v21  ;;  %v1336_v22 = vld [vmem:[#allocation10 + $0x2b0] sm:$0xff]  ;;  %v1339_v23 = vld [vmem:[#allocation10 + $0x298] sm:$0xff] }
 0x14a   :  { %v398_v32 = vmax.f32 %v393_v28, 0.0  ;;  %784 = vmatpush1.msra.mxu0 %v1182_v27  ;;  %1487 = vst [vmem:[#allocation21_spill] sm:$0xff] %v1336_v22  ;;  %1488 = vst [vmem:[#allocation22_spill] sm:$0xff] %v1339_v23  ;;  %v1342_v24 = vld [vmem:[#allocation10 + $0x290] sm:$0xff]  ;;  %v632_v25 = vld [vmem:[#allocation10 + $0x260] sm:$0xff] }
 0x14b   :  { %785 = vmatprep.subr.mxu0 %v1184_v29  ;;  %1489 = vst [vmem:[#allocation23_spill] sm:$0xff] %v1342_v24  ;;  %v1347_v26 = vld [vmem:[#allocation10 + $0x278] sm:$0xff]  ;;  %763 = vmatpush2.msra.mxu1 %v632_v25  ;;  %v629_v28 = vld [vmem:[#allocation10 + $0x248] sm:$0xff]  ;;  %v624_v25 = vld [vmem:[#allocation10 + $0x220] sm:$0xff] }
 0x14c   :  { %545 = vmatprep.mubr.f32.mxu0 %v398_v32  ;;  %786 = vmatpush1.msra.mxu0 %v1186_v31  ;;  %1490 = vst [vmem:[#allocation24_spill] sm:$0xff] %v1347_v26  ;;  %v628_v32 = vld [vmem:[#allocation10 + $0x240] sm:$0xff] }
 0x14d   :  { %546 = vmatmul.mubr.f32.gmra.mxu0 %v397_v30  ;;  %787 = vmatprep.subr.mxu0 %v1189_v33  ;;  %v1350_v30 = vld [vmem:[#allocation10 + $0x270] sm:$0xff] }
 0x14e   :  { %788 = vmatpush1.msra.mxu0 %v1192_v34  ;;  %1491 = vst [vmem:[#allocation25_spill] sm:$0xff] %v1350_v30  ;;  %764 = vmatprep.subr.mxu1 %v629_v28  ;;  %v621_v28 = vld [vmem:[#allocation10 + $0x208] sm:$0xff] }
 0x14f   :  { %789 = vmatprep.subr.mxu0 %v1195_v35  ;;  %765 = vmatpush2.msra.mxu1 %v628_v32  ;;  %v620_v32 = vld [vmem:[#allocation10 + $0x200] sm:$0xff] }
 0x150   :  { %790 = vmatpush1.msra.mxu0 %v1198_v36 }
 0x151   :  { %791 = vmatprep.subr.mxu0 %v1201_v37 }
 0x152   :  { %792 = vmatpush1.msra.mxu0 %v1204_v38 }
 0x153   :  { %793 = vmatprep.subr.mxu0 %v1207_v39 }
 0x154   :  { %794 = vmatpush1.msra.mxu0 %v1210_v40 }
 0x155   :  { %795 = vmatprep.subr.mxu0 %v1213_v41 }
 0x156   :  { %796 = vmatpush1.msra.mxu0 %v1216_v42 }
 0x157   :  { %797 = vmatprep.subr.mxu0 %v1219_v43 }
 0x158   :  { %798 = vmatpush1.msra.mxu0 %v1222_v44 }
 0x159   :  { %799 = vmatprep.subr.mxu0 %v1225_v45 }
 0x15a   :  { %800 = vmatpush1.msra.mxu0 %v1228_v46 }
 0x15b   :  { %801 = vmatprep.subr.mxu0 %v1231_v47 }
 0x15c   :  { %802 = vmatpush1.msra.mxu0 %v1234_v48 }
 0x15d   :  { %803 = vmatprep.subr.mxu0 %v1237_v49 }
 0x15e   :  { %804 = vmatpush1.msra.mxu0 %v1240_v50 }
 0x15f   :  { %805 = vmatprep.subr.mxu0 %v1243_v51 }
 0x160   :  { %806 = vmatpush1.msra.mxu0 %v1246_v52 }
 0x161   :  { %807 = vmatprep.subr.mxu0 %v1249_v53 }
 0x162   :  { %808 = vmatpush1.msra.mxu0 %v1252_v54 }
 0x163   :  { %809 = vmatprep.subr.mxu0 %v1255_v55 }
 0x164   :  { %810 = vmatpush1.msra.mxu0 %v1258_v56 }
 0x165   :  { %811 = vmatprep.subr.mxu0 %v1261_v57 }
 0x166   :  { %812 = vmatpush1.msra.mxu0 %v1264_v58 }
 0x167   :  { %813 = vmatprep.subr.mxu0 %v1267_v59 }
 0x168   :  { %814 = vmatpush1.msra.mxu0 %v1270_v60 }
 0x169   :  { %815 = vmatprep.subr.mxu0 %v1273_v61 }
 0x16a   :  { %816 = vmatpush2.msra.mxu0 %v1276_v62 }
 0x16b   :  { %817 = vmatprep.subr.mxu0 %v1279_v63 }
 0x16c   :  { %818 = vmatpush2.msra.mxu0 %v1282_v0 }
 0x16d   :  { %819 = vmatprep.subr.mxu0 %v1285_v1 }
 0x16e   :  { %820 = vmatpush2.msra.mxu0 %v1288_v2 }
 0x16f   :  { %821 = vmatprep.subr.mxu0 %v1291_v5 }
 0x170   :  { %822 = vmatpush2.msra.mxu0 %v1294_v7 }
 0x171   :  { %823 = vmatprep.subr.mxu0 %v1297_v8 }
 0x172   :  { %824 = vmatpush2.msra.mxu0 %v1300_v9 }
 0x173   :  { %825 = vmatprep.subr.mxu0 %v1303_v11 }
 0x174   :  { %826 = vmatpush2.msra.mxu0 %v1306_v12 }
 0x175   :  { %827 = vmatprep.subr.mxu0 %v1309_v13 }
 0x176   :  { %828 = vmatpush2.msra.mxu0 %v1312_v14 }
 0x177   :  { %829 = vmatprep.subr.mxu0 %v1315_v15 }
 0x178   :  { %830 = vmatpush2.msra.mxu0 %v1318_v16 }
 0x179   :  { %831 = vmatprep.subr.mxu0 %v1321_v17 }
 0x17a   :  { %832 = vmatpush2.msra.mxu0 %v1324_v18 }
 0x17b   :  { %833 = vmatprep.subr.mxu0 %v1327_v19 }
 0x17c   :  { %834 = vmatpush2.msra.mxu0 %v1330_v20 }
 0x17d   :  { %835 = vmatprep.subr.mxu0 %v1333_v21 }
 0x17e   :  { %836 = vmatpush2.msra.mxu0 %v1336_v22 }
 0x17f   :  { %837 = vmatprep.subr.mxu0 %v1339_v23  ;;  %v625_v23 = vld [vmem:[#allocation10 + $0x228] sm:$0xff] }
 0x180   :  { %838 = vmatpush2.msra.mxu0 %v1342_v24  ;;  %v1356_v24 = vld [vmem:[#allocation10 + $0x250] sm:$0xff]  ;;  %766 = vmatprep.subr.mxu1 %v625_v23 }
 0x181   :  { %839 = vmatprep.subr.mxu0 %v1347_v26  ;;  %1493 = vst [vmem:[#allocation27_spill] sm:$0xff] %v1356_v24  ;;  %v1359_v26 = vld [vmem:[#allocation10 + $0x238] sm:$0xff]  ;;  %767 = vmatpush2.msra.mxu1 %v624_v25  ;;  %v1368_v23 = vld [vmem:[#allocation10 + $0x210] sm:$0xff] }
 0x182   :  { %840 = vmatpush2.msra.mxu0 %v1350_v30  ;;  %1494 = vst [vmem:[#allocation28_spill] sm:$0xff] %v1359_v26  ;;  %v1362_v30 = vld [vmem:[#allocation10 + $0x230] sm:$0xff]  ;;  %768 = vmatprep.subr.mxu1 %v621_v28  ;;  %1497 = vst [vmem:[#allocation31_spill] sm:$0xff] %v1368_v23  ;;  %v463_v25 = vld [vmem:[#allocation8] sm:$0x3] }
 0x183   :  { %841 = vmatprep.subr.mxu0 %v1353_v3  ;;  %1495 = vst [vmem:[#allocation29_spill] sm:$0xff] %v1362_v30  ;;  %v1365_v3 = vld [vmem:[#allocation10 + $0x218] sm:$0xff]  ;;  %769 = vmatpush2.msra.mxu1 %v620_v32 }
 0x184   :  { %842 = vmatpush2.msra.mxu0 %v1356_v24  ;;  %1496 = vst [vmem:[#allocation30_spill] sm:$0xff] %v1365_v3  ;;  %887 = vmatprep.subr.mxu1 %v1166_v10  ;;  %v472_v24 = vrot.slane %v463_v25, %v1178_v6 }
 0x185   :  { %843 = vmatprep.subr.mxu0 %v1359_v26  ;;  %v468_v26 = vrot.slane %v463_v25, %v1172_v4 }
 0x186   :  { %844 = vmatpush2.msra.mxu0 %v1362_v30 }
 0x187   :  { %845 = vmatprep.subr.mxu0 %v1365_v3 }
 0x188   :  { %846 = vmatpush2.msra.mxu0 %v1368_v23 }
 0x209   :  { %v541_v28 = vpop.f32.mrf.mxu0 }
 0x20a   :  { %v542_v22 = vadd.f32 %v541_v28, %v468_v26 }
 0x20b   :  { %v543_v30 = vpop.f32.mrf.mxu0 }
 0x20c   :  { %v544_v21 = vadd.f32 %v543_v30, %v472_v24  ;;  %v552_v3 = vmax.f32 %v542_v22, 0.0 }
 0x20d   :  { %v547_v20 = vpop.f32.mrf.mxu0 }
 0x20e   :  { %v553_v19 = vmax.f32 %v544_v21, 0.0  ;;  %v1374_v32 = vadd.f32 %v547_v20, %v468_v26 }
 0x20f   :  { %v549_v18 = vpop.f32.mrf.mxu0 }
 0x210   :  { %770 = vmatprep.mubr.f32.mxu1 %v553_v19  ;;  %847 = vmatprep.mubr.f32.mxu0 %v553_v19  ;;  %v550_v10 = vadd.f32 %v549_v18, %v472_v24  ;;  %v554_v23 = vmax.f32 %v1374_v32, 0.0 }
 0x211   :  { %771 = vmatmul.mubr.f32.vlgmr.msra.gmra.mxu1 %v552_v3  ;;  %848 = vmatmul.mubr.f32.vlgmr.msra.gmra.mxu0 %v552_v3  ;;  %v1498_v3 = vld [vmem:[#allocation17_spill] sm:$0xff] }
 0x212   :  { %919 = vmatpush1.msra.mxu1 %v1182_v27  ;;  %v555_v25 = vmax.f32 %v550_v10, 0.0  ;;  %v1499_v27 = vld [vmem:[#allocation18_spill] sm:$0xff] }
 0x213   :  { %888 = vmatprep.subr.mxu1 %v1184_v29  ;;  %v1500_v29 = vld [vmem:[#allocation19_spill] sm:$0xff] }
 0x214   :  { %920 = vmatpush1.msra.mxu1 %v1186_v31  ;;  %776 = vmatprep.mubr.f32.mxu1 %v555_v25  ;;  %v1501_v31 = vld [vmem:[#allocation20_spill] sm:$0xff] }
 0x215   :  { %889 = vmatprep.subr.mxu1 %v1189_v33  ;;  %777 = vmatmul.mubr.f32.gmra.mxu1 %v554_v23  ;;  %v1502_v33 = vld [vmem:[#allocation21_spill] sm:$0xff] }
 0x216   :  { %921 = vmatpush1.msra.mxu1 %v1192_v34  ;;  %853 = vmatprep.mubr.f32.mxu1 %v555_v25  ;;  %v1503_v34 = vld [vmem:[#allocation22_spill] sm:$0xff] }
 0x217   :  { %890 = vmatprep.subr.mxu1 %v1195_v35  ;;  %v1504_v35 = vld [vmem:[#allocation23_spill] sm:$0xff] }
 0x218   :  { %922 = vmatpush1.msra.mxu1 %v1198_v36  ;;  %v1505_v36 = vld [vmem:[#allocation24_spill] sm:$0xff] }
 0x219   :  { %891 = vmatprep.subr.mxu1 %v1201_v37  ;;  %v1506_v37 = vld [vmem:[#allocation25_spill] sm:$0xff] }
 0x21a   :  { %923 = vmatpush1.msra.mxu1 %v1204_v38  ;;  %v1507_v38 = vld [vmem:[#allocation26_spill] sm:$0xff] }
 0x21b   :  { %892 = vmatprep.subr.mxu1 %v1207_v39  ;;  %v1508_v39 = vld [vmem:[#allocation27_spill] sm:$0xff] }
 0x21c   :  { %924 = vmatpush1.msra.mxu1 %v1210_v40  ;;  %v1509_v40 = vld [vmem:[#allocation28_spill] sm:$0xff] }
 0x21d   :  { %893 = vmatprep.subr.mxu1 %v1213_v41  ;;  %v1510_v41 = vld [vmem:[#allocation29_spill] sm:$0xff] }
 0x21e   :  { %925 = vmatpush1.msra.mxu1 %v1216_v42  ;;  %v1511_v42 = vld [vmem:[#allocation30_spill] sm:$0xff] }
 0x21f   :  { %894 = vmatprep.subr.mxu1 %v1219_v43  ;;  %v1512_v43 = vld [vmem:[#allocation31_spill] sm:$0xff] }
 0x220   :  { %926 = vmatpush1.msra.mxu1 %v1222_v44  ;;  %v1513_v44 = vld [vmem:[#allocation16_spill] sm:$0xff] }
 0x221   :  { %895 = vmatprep.subr.mxu1 %v1225_v45  ;;  %v696_v45 = vsub.s32 2, %v1513_v44 }
 0x222   :  { %927 = vmatpush1.msra.mxu1 %v1228_v46  ;;  %v684_v46 = vld [vmem:[%s1463_s6] sm:$0xf]  ;;  %s1098_s6 = smov [#allocation11]  }
 0x223   :  { %896 = vmatprep.subr.mxu1 %v1231_v47  ;;  %v700_v47 = vsub.s32 3, %v1513_v44  ;;  %s873_s28 = sshll.u32 %s1098_s6, 4  ;;  %s874_s28 = int_to_ptr.vmem [resolvable:$true] %s873_s28 }
 0x224   :  { %928 = vmatpush1.msra.mxu1 %v1234_v48  ;;  %v689_v48 = vrot.slane %v684_v46, %v1172_v4  ;;  %s1061_s29 = scalar_lea.vmem %s874_s28, 1024  ;;  %p1066_p12 = scmp.lt.s32.totalorder %s874_s28, %s874_s28 }
 0x225   :  { %897 = vmatprep.subr.mxu1 %v1237_v49  ;;  %v697_v49 = vrot.slane %v684_v46, %v696_v45  ;;  %p1062_p11 = scmp.ne.s32.totalorder %s874_s28, %s1061_s29  ;;  %p1067_p13 = scmp.lt.s32.totalorder %s1061_s29, %s1061_s29 }
 0x226   :  { %929 = vmatpush1.msra.mxu1 %v1240_v50  ;;  %v693_v50 = vrot.slane %v684_v46, %v1178_v6 }
 0x227   :  { %898 = vmatprep.subr.mxu1 %v1243_v51  ;;  %v701_v51 = vrot.slane %v684_v46, %v700_v47  ;;  %p1068_p0 = por %p1067_p13, %p1066_p12 }
 0x228   :  { %930 = vmatpush1.msra.mxu1 %v1246_v52 }
 0x229   :  { %899 = vmatprep.subr.mxu1 %v1249_v53  ;;  %p1069_p1 = pnand %p1068_p0, %p1062_p11 }
 0x22a   :  { %931 = vmatpush1.msra.mxu1 %v1252_v54 }
 0x22b   :  { %900 = vmatprep.subr.mxu1 %v1255_v55 }
 0x22c   :  { %932 = vmatpush1.msra.mxu1 %v1258_v56 }
 0x22d   :  { %901 = vmatprep.subr.mxu1 %v1261_v57 }
 0x22e   :  { %933 = vmatpush1.msra.mxu1 %v1264_v58 }
 0x22f   :  { %902 = vmatprep.subr.mxu1 %v1267_v59 }
 0x230   :  { %934 = vmatpush1.msra.mxu1 %v1270_v60 }
 0x231   :  { %903 = vmatprep.subr.mxu1 %v1273_v61 }
 0x232   :  { %935 = vmatpush2.msra.mxu1 %v1276_v62 }
 0x233   :  { %904 = vmatprep.subr.mxu1 %v1279_v63 }
 0x234   :  { %936 = vmatpush2.msra.mxu1 %v1282_v0 }
 0x235   :  { %905 = vmatprep.subr.mxu1 %v1285_v1 }
 0x236   :  { %937 = vmatpush2.msra.mxu1 %v1288_v2 }
 0x237   :  { %906 = vmatprep.subr.mxu1 %v1291_v5 }
 0x238   :  { %938 = vmatpush2.msra.mxu1 %v1294_v7 }
 0x239   :  { %907 = vmatprep.subr.mxu1 %v1297_v8 }
 0x23a   :  { %939 = vmatpush2.msra.mxu1 %v1300_v9 }
 0x23b   :  { %908 = vmatprep.subr.mxu1 %v1303_v11 }
 0x23c   :  { %940 = vmatpush2.msra.mxu1 %v1306_v12 }
 0x23d   :  { %909 = vmatprep.subr.mxu1 %v1309_v13 }
 0x23e   :  { %941 = vmatpush2.msra.mxu1 %v1312_v14 }
 0x23f   :  { %910 = vmatprep.subr.mxu1 %v1315_v15 }
 0x240   :  { %942 = vmatpush2.msra.mxu1 %v1318_v16 }
 0x241   :  { %911 = vmatprep.subr.mxu1 %v1321_v17 }
 0x242   :  { %943 = vmatpush2.msra.mxu1 %v1498_v3 }
 0x243   :  { %912 = vmatprep.subr.mxu1 %v1499_v27 }
 0x244   :  { %944 = vmatpush2.msra.mxu1 %v1500_v29 }
 0x245   :  { %913 = vmatprep.subr.mxu1 %v1501_v31 }
 0x246   :  { %945 = vmatpush2.msra.mxu1 %v1502_v33 }
 0x247   :  { %914 = vmatprep.subr.mxu1 %v1503_v34 }
 0x248   :  { %946 = vmatpush2.msra.mxu1 %v1504_v35 }
 0x249   :  { %915 = vmatprep.subr.mxu1 %v1505_v36 }
 0x24a   :  { %947 = vmatpush2.msra.mxu1 %v1506_v37 }
 0x24b   :  { %916 = vmatprep.subr.mxu1 %v1507_v38 }
 0x24c   :  { %948 = vmatpush2.msra.mxu1 %v1508_v39 }
 0x24d   :  { %917 = vmatprep.subr.mxu1 %v1509_v40 }
 0x24e   :  { %949 = vmatpush2.msra.mxu1 %v1510_v41 }
 0x24f   :  { %918 = vmatprep.subr.mxu1 %v1511_v42 }
 0x250   :  { %950 = vmatpush2.msra.mxu1 %v1512_v43 }
 0x251   :  { %854 = vmatmul.mubr.f32.vlgmr.msra.gmra.mxu1 %v554_v23 }
 0x2d1   :  { %v772_v52 = vpop.f32.mrf.mxu1  ;;  %v849_v53 = vpop.f32.mrf.mxu0 }
 0x2d2   :  { %v773_v54 = vadd.f32 %v772_v52, %v689_v48  ;;  %v850_v55 = vadd.f32 %v849_v53, %v697_v49 }
 0x2d3   :  { %v774_v56 = vpop.f32.mrf.mxu1  ;;  %v851_v57 = vpop.f32.mrf.mxu0 }
 0x2d4   :  { %860 = vst [vmem:[#allocation11] sm:$0xff] %v773_v54  ;;  %862 = vst [vmem:[#allocation11 + $0x10] sm:$0xff] %v850_v55  ;;  %v775_v58 = vadd.f32 %v774_v56, %v693_v50  ;;  %v852_v59 = vadd.f32 %v851_v57, %v701_v51 }
 0x2d5   :  { %v778_v60 = vpop.f32.mrf.mxu1 }
 0x2d6   :  { %861 = vst [vmem:[#allocation11 + $0x8] sm:$0xff] %v775_v58  ;;  %863 = vst [vmem:[#allocation11 + $0x18] sm:$0xff] %v852_v59  ;;  %v779_v61 = vadd.f32 %v778_v60, %v689_v48 }
 0x2d7   :  { %v780_v62 = vpop.f32.mrf.mxu1 }
 0x2d8   :  { %864 = vst [vmem:[#allocation11 + $0x20] sm:$0xff] %v779_v61  ;;  %v781_v4 = vadd.f32 %v780_v62, %v693_v50 }
 0x2da   :  { %865 = vst [vmem:[#allocation11 + $0x28] sm:$0xff] %v781_v4 }
 0x311   :  { %v855_v6 = vpop.f32.mrf.mxu1 }
 0x312   :  { %v856_v63 = vadd.f32 %v855_v6, %v697_v49 }
 0x313   :  { %v857_v0 = vpop.f32.mrf.mxu1 }
 0x314   :  { %866 = vst [vmem:[#allocation11 + $0x30] sm:$0xff] %v856_v63  ;;  %v858_v1 = vadd.f32 %v857_v0, %v701_v51 }
 0x316   :  { %867 = vst [vmem:[#allocation11 + $0x38] sm:$0xff] %v858_v1 }
 0x317   :  { %1072 = shalt.err (!%p1069_p1)
}
 0x318   :  { %879 = dma.vmem_to_hbm [thread:$0]  %s874_s28, 1024, %s1464_s7, [#allocation4], %s1094_s1, %s1094_s1, %s1095_s16  }
 0x319   :  { %1087 = dma.done.wait [#allocation4], 1024  }
 0x31a   :  { %1088 = vsyncadd [#allocation4], 4294966272 }
 0x31b   :  { %883 = vsyncpa [#allocation3], 1 }
 0x31c   :  { %884 = vsyncpa [#allocation6], 1 }
 0x31d   :  { %885 = vsyncpa [#allocation9], 1 }
 0x31e   :  { %886 = vsyncpa [#allocation4], 1 }

</bundles_post_ra>
